<compile_context>
chip_gen: v5e
topology: v5e:2x2
jax: 0.10.0
libtpu: 0.0.40
codegen_flags: <defaults>
</compile_context>

<pallas_src>
import jax
import jax.numpy as jnp
from jax.experimental import pallas as pl
from jax.experimental.pallas import tpu as pltpu


def _round_up(n, m):
    return ((n + m - 1) // m) * m


def _swish(h):
    # Swish as defined in the PyTorch module: 2 * (x * sigmoid(x))
    return 2.0 * (h * jax.nn.sigmoid(h))


def pu_mitigation_kernel(x_ref,
                         w1_ref, b1_ref,
                         w2_ref, b2_ref,
                         w3_ref, b3_ref,
                         w4_ref, b4_ref,
                         w5t_ref, b5_ref,
                         o_ref):
    h = x_ref[...].astype(jnp.float32)

    def mxu_layer(h, w_ref, b_ref):
        # bf16 inputs on the MXU, f32 accumulation, f32 bias + activation.
        y = jnp.dot(h.astype(jnp.bfloat16), w_ref[...],
                    preferred_element_type=jnp.float32) + b_ref[...]
        return _swish(y)

    h = mxu_layer(h, w1_ref, b1_ref)   # (TB, 256)
    h = mxu_layer(h, w2_ref, b2_ref)   # (TB, 128)
    h = mxu_layer(h, w3_ref, b3_ref)   # (TB, 64)
    h = mxu_layer(h, w4_ref, b4_ref)   # (TB, 8)

    # Final 8 -> 1 projection on the VPU (broadcast-mul + lane reduce).
    z = jnp.sum(h * w5t_ref[...], axis=-1, keepdims=True) + b5_ref[...]  # (TB, 1)

    # TanhPlusOne: 2 * (tanh(x) + 1)
    o_ref[...] = (2.0 * (jnp.tanh(z) + 1.0)).astype(o_ref.dtype)


def pu_mitigation_forward(x, params, tb=512):
    """x: (B, C, H, W) or already-flat (B, F). params: list of (W, b) pairs
    with W of shape (in_features, out_features), b of shape (out_features,)
    or (1, out_features)."""
    B = x.shape[0]
    F = 1
    for d in x.shape[1:]:
        F *= d
    x_flat = x.reshape(B, F).astype(jnp.float32)

    (w1, b1), (w2, b2), (w3, b3), (w4, b4), (w5, b5) = params

    def brow(b, n):
        return jnp.asarray(b, jnp.float32).reshape(1, n)

    # bf16 weights for the MXU layers; tiny last projection stays f32 (VPU path).
    w1b = w1.astype(jnp.bfloat16)
    w2b = w2.astype(jnp.bfloat16)
    w3b = w3.astype(jnp.bfloat16)
    w4b = w4.astype(jnp.bfloat16)
    b1r = brow(b1, 256)
    b2r = brow(b2, 128)
    b3r = brow(b3, 64)
    b4r = brow(b4, 8)
    w5t = jnp.asarray(w5, jnp.float32).reshape(1, 8)
    b5r = brow(b5, 1)

    # Batch tile: multiple of 8 (sublane), capped so tiny batches don't over-pad.
    tb_eff = min(tb, _round_up(B, 8))
    grid = (pl.cdiv(B, tb_eff),)

    def full_block(shape):
        # Weights/biases: whole-array block, same block index every grid step
        # -> DMA'd once, VMEM-resident across the batch loop.
        return pl.BlockSpec(shape, lambda i: (0, 0))

    in_specs = [
        pl.BlockSpec((tb_eff, F), lambda i: (i, 0)),   # x rows, pipelined
        full_block(w1b.shape), full_block(b1r.shape),
        full_block(w2b.shape), full_block(b2r.shape),
        full_block(w3b.shape), full_block(b3r.shape),
        full_block(w4b.shape), full_block(b4r.shape),
        full_block(w5t.shape), full_block(b5r.shape),
    ]
    out_specs = pl.BlockSpec((tb_eff, 1), lambda i: (i, 0))

    flops = int(2 * B * (F * 256 + 256 * 128 + 128 * 64 + 64 * 8 + 8))
    transcendentals = int(B * (256 + 128 + 64 + 8 + 1))
    bytes_accessed = int(
        x_flat.size * 4
        + (w1b.size + w2b.size + w3b.size + w4b.size) * 2
        + (b1r.size + b2r.size + b3r.size + b4r.size) * 4
        + w5t.size * 4 + b5r.size * 4
        + B * 4)

    return pl.pallas_call(
        pu_mitigation_kernel,
        out_shape=jax.ShapeDtypeStruct((B, 1), jnp.float32),
        grid=grid,
        in_specs=in_specs,
        out_specs=out_specs,
        compiler_params=pltpu.CompilerParams(
            dimension_semantics=("parallel",)),
        cost_estimate=pl.CostEstimate(
            flops=flops,
            transcendentals=transcendentals,
            bytes_accessed=bytes_accessed),
    )(x_flat, w1b, b1r, w2b, b2r, w3b, b3r, w4b, b4r, w5t, b5r)


def init_params(key, inputsize):
    """Deterministic init mirroring nn.Linear's U(-1/sqrt(in), 1/sqrt(in))."""
    sizes = [(inputsize, 256), (256, 128), (128, 64), (64, 8), (8, 1)]
    params = []
    for (fan_in, fan_out) in sizes:
        key, kw, kb = jax.random.split(key, 3)
        bound = 1.0 / (fan_in ** 0.5)
        w = jax.random.uniform(kw, (fan_in, fan_out), jnp.float32,
                               minval=-bound, maxval=bound)
        b = jax.random.uniform(kb, (1, fan_out), jnp.float32,
                               minval=-bound, maxval=bound)
        params.append((w, b))
    return params


def reference_forward(x, params):
    """Plain-JAX reference mirroring the kernel's numerics (bf16 MXU inputs,
    f32 accumulation, f32 elementwise)."""
    (w1, b1), (w2, b2), (w3, b3), (w4, b4), (w5, b5) = params
    h = x.reshape(x.shape[0], -1).astype(jnp.float32)
    for w, b in ((w1, b1), (w2, b2), (w3, b3), (w4, b4)):
        y = jnp.dot(h.astype(jnp.bfloat16), w.astype(jnp.bfloat16),
                    preferred_element_type=jnp.float32) + b.reshape(1, -1)
        h = 2.0 * (y * jax.nn.sigmoid(y))
    z = jnp.sum(h * w5.reshape(1, 8), axis=-1, keepdims=True) + b5.reshape(1, 1)
    return 2.0 * (jnp.tanh(z) + 1.0)


if __name__ == "__main__":
    key = jax.random.PRNGKey(0)
    kx, kp = jax.random.split(key)

    # Small NCHW input, like the PyTorch module would see before Flatten.
    B, C, H, W = 2, 4, 16, 16
    inputsize = C * H * W  # 1024
    x = jax.random.normal(kx, (B, C, H, W), jnp.float32)

    params = init_params(kp, inputsize)

    out = pu_mitigation_forward(x, params)
    out = jax.block_until_ready(out)

    ref = reference_forward(x, params)
    assert out.shape == (B, 1), out.shape
    assert bool(jnp.all(jnp.isfinite(out))), out
    assert jnp.allclose(out, ref, atol=2e-3, rtol=2e-3), (out, ref)

    print("KERNEL_OK")
</pallas_src>

<mosaic_0001>
module attributes {stable_mosaic.version = 11 : i64} {
  func.func @pu_mitigation_kernel(%arg0: i32, %arg1: memref<8x1024xf32, #tpu.memory_space<vmem>>, %arg2: memref<1024x256xbf16, #tpu.memory_space<vmem>>, %arg3: memref<1x256xf32, #tpu.memory_space<vmem>>, %arg4: memref<256x128xbf16, #tpu.memory_space<vmem>>, %arg5: memref<1x128xf32, #tpu.memory_space<vmem>>, %arg6: memref<128x64xbf16, #tpu.memory_space<vmem>>, %arg7: memref<1x64xf32, #tpu.memory_space<vmem>>, %arg8: memref<64x8xbf16, #tpu.memory_space<vmem>>, %arg9: memref<1x8xf32, #tpu.memory_space<vmem>>, %arg10: memref<1x8xf32, #tpu.memory_space<vmem>>, %arg11: memref<1x1xf32, #tpu.memory_space<vmem>>, %arg12: memref<8x1xf32, #tpu.memory_space<vmem>>) attributes {dimension_semantics = [#tpu.dimension_semantics<parallel>], iteration_bounds = array<i64: 1>, scalar_prefetch = 0 : i64, scratch_operands = 0 : i64, tpu.core_type = #tpu.core_type<tc>, window_params = [{transform_indices = @transform_0, window_bounds = array<i64: 8, 1024>}, {pipeline_mode = #tpu.pipeline_mode<synchronous>, transform_indices = @transform_1, window_bounds = array<i64: 1024, 256>}, {pipeline_mode = #tpu.pipeline_mode<synchronous>, transform_indices = @transform_2, window_bounds = array<i64: 1, 256>}, {pipeline_mode = #tpu.pipeline_mode<synchronous>, transform_indices = @transform_3, window_bounds = array<i64: 256, 128>}, {pipeline_mode = #tpu.pipeline_mode<synchronous>, transform_indices = @transform_4, window_bounds = array<i64: 1, 128>}, {pipeline_mode = #tpu.pipeline_mode<synchronous>, transform_indices = @transform_5, window_bounds = array<i64: 128, 64>}, {pipeline_mode = #tpu.pipeline_mode<synchronous>, transform_indices = @transform_6, window_bounds = array<i64: 1, 64>}, {pipeline_mode = #tpu.pipeline_mode<synchronous>, transform_indices = @transform_7, window_bounds = array<i64: 64, 8>}, {pipeline_mode = #tpu.pipeline_mode<synchronous>, transform_indices = @transform_8, window_bounds = array<i64: 1, 8>}, {pipeline_mode = #tpu.pipeline_mode<synchronous>, transform_indices = @transform_9, window_bounds = array<i64: 1, 8>}, {pipeline_mode = #tpu.pipeline_mode<synchronous>, transform_indices = @transform_10, window_bounds = array<i64: 1, 1>}, {transform_indices = @transform_11, window_bounds = array<i64: 8, 1>}]} {
    %c0 = arith.constant 0 : index
    %c0_0 = arith.constant 0 : index
    %0 = vector.load %arg1[%c0, %c0_0] : memref<8x1024xf32, #tpu.memory_space<vmem>>, vector<8x1024xf32>
    %1 = arith.truncf %0 : vector<8x1024xf32> to vector<8x1024xbf16>
    %c0_1 = arith.constant 0 : index
    %c0_2 = arith.constant 0 : index
    %2 = vector.load %arg2[%c0_1, %c0_2] : memref<1024x256xbf16, #tpu.memory_space<vmem>>, vector<1024x256xbf16>
    %cst = arith.constant dense<0.000000e+00> : vector<8x256xf32>
    %3 = tpu.matmul %1, %2, %cst {dimension_numbers = #tpu.dot_dimension_numbers<[1], [0], [0], [1], [0, 0, 1, 1], [], []>} : vector<8x1024xbf16>, vector<1024x256xbf16>, vector<8x256xf32> -> vector<8x256xf32>
    %c0_3 = arith.constant 0 : index
    %c0_4 = arith.constant 0 : index
    %4 = vector.load %arg3[%c0_3, %c0_4] : memref<1x256xf32, #tpu.memory_space<vmem>>, vector<1x256xf32>
    %5 = vector.broadcast %4 : vector<1x256xf32> to vector<8x256xf32>
    %6 = arith.addf %3, %5 : vector<8x256xf32>
    %7 = arith.negf %6 : vector<8x256xf32>
    %8 = math.exp %7 : vector<8x256xf32>
    %cst_5 = arith.constant 1.000000e+00 : f32
    %9 = vector.broadcast %cst_5 : f32 to vector<8x256xf32>
    %10 = arith.addf %9, %8 : vector<8x256xf32>
    %11 = arith.divf %9, %10 : vector<8x256xf32>
    %12 = arith.mulf %6, %11 : vector<8x256xf32>
    %cst_6 = arith.constant 2.000000e+00 : f32
    %13 = vector.broadcast %cst_6 : f32 to vector<8x256xf32>
    %14 = arith.mulf %13, %12 : vector<8x256xf32>
    %15 = arith.truncf %14 : vector<8x256xf32> to vector<8x256xbf16>
    %c0_7 = arith.constant 0 : index
    %c0_8 = arith.constant 0 : index
    %16 = vector.load %arg4[%c0_7, %c0_8] : memref<256x128xbf16, #tpu.memory_space<vmem>>, vector<256x128xbf16>
    %cst_9 = arith.constant dense<0.000000e+00> : vector<8x128xf32>
    %17 = tpu.matmul %15, %16, %cst_9 {dimension_numbers = #tpu.dot_dimension_numbers<[1], [0], [0], [1], [0, 0, 1, 1], [], []>} : vector<8x256xbf16>, vector<256x128xbf16>, vector<8x128xf32> -> vector<8x128xf32>
    %c0_10 = arith.constant 0 : index
    %c0_11 = arith.constant 0 : index
    %18 = vector.load %arg5[%c0_10, %c0_11] : memref<1x128xf32, #tpu.memory_space<vmem>>, vector<1x128xf32>
    %19 = vector.broadcast %18 : vector<1x128xf32> to vector<8x128xf32>
    %20 = arith.addf %17, %19 : vector<8x128xf32>
    %21 = arith.negf %20 : vector<8x128xf32>
    %22 = math.exp %21 : vector<8x128xf32>
    %cst_12 = arith.constant 1.000000e+00 : f32
    %23 = vector.broadcast %cst_12 : f32 to vector<8x128xf32>
    %24 = arith.addf %23, %22 : vector<8x128xf32>
    %25 = arith.divf %23, %24 : vector<8x128xf32>
    %26 = arith.mulf %20, %25 : vector<8x128xf32>
    %cst_13 = arith.constant 2.000000e+00 : f32
    %27 = vector.broadcast %cst_13 : f32 to vector<8x128xf32>
    %28 = arith.mulf %27, %26 : vector<8x128xf32>
    %29 = arith.truncf %28 : vector<8x128xf32> to vector<8x128xbf16>
    %c0_14 = arith.constant 0 : index
    %c0_15 = arith.constant 0 : index
    %30 = vector.load %arg6[%c0_14, %c0_15] : memref<128x64xbf16, #tpu.memory_space<vmem>>, vector<128x64xbf16>
    %cst_16 = arith.constant dense<0.000000e+00> : vector<8x64xf32>
    %31 = tpu.matmul %29, %30, %cst_16 {dimension_numbers = #tpu.dot_dimension_numbers<[1], [0], [0], [1], [0, 0, 1, 1], [], []>} : vector<8x128xbf16>, vector<128x64xbf16>, vector<8x64xf32> -> vector<8x64xf32>
    %c0_17 = arith.constant 0 : index
    %c0_18 = arith.constant 0 : index
    %32 = vector.load %arg7[%c0_17, %c0_18] : memref<1x64xf32, #tpu.memory_space<vmem>>, vector<1x64xf32>
    %33 = vector.broadcast %32 : vector<1x64xf32> to vector<8x64xf32>
    %34 = arith.addf %31, %33 : vector<8x64xf32>
    %35 = arith.negf %34 : vector<8x64xf32>
    %36 = math.exp %35 : vector<8x64xf32>
    %cst_19 = arith.constant 1.000000e+00 : f32
    %37 = vector.broadcast %cst_19 : f32 to vector<8x64xf32>
    %38 = arith.addf %37, %36 : vector<8x64xf32>
    %39 = arith.divf %37, %38 : vector<8x64xf32>
    %40 = arith.mulf %34, %39 : vector<8x64xf32>
    %cst_20 = arith.constant 2.000000e+00 : f32
    %41 = vector.broadcast %cst_20 : f32 to vector<8x64xf32>
    %42 = arith.mulf %41, %40 : vector<8x64xf32>
    %43 = arith.truncf %42 : vector<8x64xf32> to vector<8x64xbf16>
    %c0_21 = arith.constant 0 : index
    %c0_22 = arith.constant 0 : index
    %44 = vector.load %arg8[%c0_21, %c0_22] : memref<64x8xbf16, #tpu.memory_space<vmem>>, vector<64x8xbf16>
    %cst_23 = arith.constant dense<0.000000e+00> : vector<8x8xf32>
    %45 = tpu.matmul %43, %44, %cst_23 {dimension_numbers = #tpu.dot_dimension_numbers<[1], [0], [0], [1], [0, 0, 1, 1], [], []>} : vector<8x64xbf16>, vector<64x8xbf16>, vector<8x8xf32> -> vector<8x8xf32>
    %c0_24 = arith.constant 0 : index
    %c0_25 = arith.constant 0 : index
    %46 = vector.load %arg9[%c0_24, %c0_25] : memref<1x8xf32, #tpu.memory_space<vmem>>, vector<1x8xf32>
    %47 = vector.broadcast %46 : vector<1x8xf32> to vector<8x8xf32>
    %48 = arith.addf %45, %47 : vector<8x8xf32>
    %49 = arith.negf %48 : vector<8x8xf32>
    %50 = math.exp %49 : vector<8x8xf32>
    %cst_26 = arith.constant 1.000000e+00 : f32
    %51 = vector.broadcast %cst_26 : f32 to vector<8x8xf32>
    %52 = arith.addf %51, %50 : vector<8x8xf32>
    %53 = arith.divf %51, %52 : vector<8x8xf32>
    %54 = arith.mulf %48, %53 : vector<8x8xf32>
    %cst_27 = arith.constant 2.000000e+00 : f32
    %55 = vector.broadcast %cst_27 : f32 to vector<8x8xf32>
    %56 = arith.mulf %55, %54 : vector<8x8xf32>
    %c0_28 = arith.constant 0 : index
    %c0_29 = arith.constant 0 : index
    %57 = vector.load %arg10[%c0_28, %c0_29] : memref<1x8xf32, #tpu.memory_space<vmem>>, vector<1x8xf32>
    %58 = vector.broadcast %57 : vector<1x8xf32> to vector<8x8xf32>
    %59 = arith.mulf %56, %58 : vector<8x8xf32>
    %cst_30 = arith.constant dense<0.000000e+00> : vector<8xf32>
    %60 = vector.multi_reduction <add>, %59, %cst_30 [1] : vector<8x8xf32> to vector<8xf32>
    %61 = vector.shape_cast %60 : vector<8xf32> to vector<8x1xf32>
    %c0_31 = arith.constant 0 : index
    %c0_32 = arith.constant 0 : index
    %62 = vector.load %arg11[%c0_31, %c0_32] : memref<1x1xf32, #tpu.memory_space<vmem>>, vector<1x1xf32>
    %63 = vector.broadcast %62 : vector<1x1xf32> to vector<8x1xf32>
    %64 = arith.addf %61, %63 : vector<8x1xf32>
    %65 = math.tanh %64 : vector<8x1xf32>
    %cst_33 = arith.constant 1.000000e+00 : f32
    %66 = vector.broadcast %cst_33 : f32 to vector<8x1xf32>
    %67 = arith.addf %65, %66 : vector<8x1xf32>
    %cst_34 = arith.constant 2.000000e+00 : f32
    %68 = vector.broadcast %cst_34 : f32 to vector<8x1xf32>
    %69 = arith.mulf %68, %67 : vector<8x1xf32>
    %c0_35 = arith.constant 0 : index
    %c0_36 = arith.constant 0 : index
    %70 = vector.load %arg12[%c0_35, %c0_36] : memref<8x1xf32, #tpu.memory_space<vmem>>, vector<8x1xf32>
    tpu.vector_store %arg12[%c0_35, %c0_36], %69 {strides = array<i32>} : memref<8x1xf32, #tpu.memory_space<vmem>>, vector<8x1xf32>,
    return
  }
  func.func @transform_0(%arg0: i32) -> (i32, i32) {
    %c0_i32 = arith.constant 0 : i32
    %c0_i32_0 = arith.constant 0 : i32
    return %arg0, %c0_i32 : i32, i32
  }
  func.func @transform_1(%arg0: i32) -> (i32, i32) {
    %c0_i32 = arith.constant 0 : i32
    %c0_i32_0 = arith.constant 0 : i32
    %c0_i32_1 = arith.constant 0 : i32
    return %c0_i32, %c0_i32_0 : i32, i32
  }
  func.func @transform_2(%arg0: i32) -> (i32, i32) {
    %c0_i32 = arith.constant 0 : i32
    %c0_i32_0 = arith.constant 0 : i32
    %c0_i32_1 = arith.constant 0 : i32
    return %c0_i32, %c0_i32_0 : i32, i32
  }
  func.func @transform_3(%arg0: i32) -> (i32, i32) {
    %c0_i32 = arith.constant 0 : i32
    %c0_i32_0 = arith.constant 0 : i32
    %c0_i32_1 = arith.constant 0 : i32
    return %c0_i32, %c0_i32_0 : i32, i32
  }
  func.func @transform_4(%arg0: i32) -> (i32, i32) {
    %c0_i32 = arith.constant 0 : i32
    %c0_i32_0 = arith.constant 0 : i32
    %c0_i32_1 = arith.constant 0 : i32
    return %c0_i32, %c0_i32_0 : i32, i32
  }
  func.func @transform_5(%arg0: i32) -> (i32, i32) {
    %c0_i32 = arith.constant 0 : i32
    %c0_i32_0 = arith.constant 0 : i32
    %c0_i32_1 = arith.constant 0 : i32
    return %c0_i32, %c0_i32_0 : i32, i32
  }
  func.func @transform_6(%arg0: i32) -> (i32, i32) {
    %c0_i32 = arith.constant 0 : i32
    %c0_i32_0 = arith.constant 0 : i32
    %c0_i32_1 = arith.constant 0 : i32
    return %c0_i32, %c0_i32_0 : i32, i32
  }
  func.func @transform_7(%arg0: i32) -> (i32, i32) {
    %c0_i32 = arith.constant 0 : i32
    %c0_i32_0 = arith.constant 0 : i32
    %c0_i32_1 = arith.constant 0 : i32
    return %c0_i32, %c0_i32_0 : i32, i32
  }
  func.func @transform_8(%arg0: i32) -> (i32, i32) {
    %c0_i32 = arith.constant 0 : i32
    %c0_i32_0 = arith.constant 0 : i32
    %c0_i32_1 = arith.constant 0 : i32
    return %c0_i32, %c0_i32_0 : i32, i32
  }
  func.func @transform_9(%arg0: i32) -> (i32, i32) {
    %c0_i32 = arith.constant 0 : i32
    %c0_i32_0 = arith.constant 0 : i32
    %c0_i32_1 = arith.constant 0 : i32
    return %c0_i32, %c0_i32_0 : i32, i32
  }
  func.func @transform_10(%arg0: i32) -> (i32, i32) {
    %c0_i32 = arith.constant 0 : i32
    %c0_i32_0 = arith.constant 0 : i32
    %c0_i32_1 = arith.constant 0 : i32
    return %c0_i32, %c0_i32_0 : i32, i32
  }
  func.func @transform_11(%arg0: i32) -> (i32, i32) {
    %c0_i32 = arith.constant 0 : i32
    %c0_i32_0 = arith.constant 0 : i32
    return %arg0, %c0_i32 : i32, i32
  }
}

</mosaic_0001>

<bundles_post_ra>
// kernel: tpu_custom_call.1
= control target key start
LH: loop header
LB: loop body
LE: loop exit
PB: predicated region body
PF: predicated region fallthrough
CT: control target
= control target key end

     0   :  { %s2657_s0 = inlined_call_operand.hbm [shape: f32[2,1024], index: 0, kind: input, shape index: {}]   ;;  %s2658_s1 = inlined_call_operand.hbm [shape: bf16[1024,256], index: 1, kind: input, shape index: {}]   ;;  %s2659_s2 = inlined_call_operand.vmem [shape: f32[1,256], index: 2, kind: input, shape index: {}]   ;;  %s2660_s3 = inlined_call_operand.vmem [shape: bf16[256,128], index: 3, kind: input, shape index: {}]   ;;  %s2661_s4 = inlined_call_operand.vmem [shape: f32[1,128], index: 4, kind: input, shape index: {}]   ;;  %s2662_s5 = inlined_call_operand.vmem [shape: bf16[128,64], index: 5, kind: input, shape index: {}]   ;;  %s2663_s6 = inlined_call_operand.vmem [shape: f32[1,64], index: 6, kind: input, shape index: {}]   ;;  %s2664_s7 = inlined_call_operand.vmem [shape: bf16[64,8], index: 7, kind: input, shape index: {}]   ;;  %s2665_s8 = inlined_call_operand.vmem [shape: f32[1,8], index: 8, kind: input, shape index: {}]   ;;  %s2666_s9 = inlined_call_operand.vmem [shape: f32[1,8], index: 9, kind: input, shape index: {}]   ;;  %s2667_s10 = inlined_call_operand.<no memory space> [shape: f32[1,1], index: 10, kind: input, shape index: {}]   ;;  %s2668_s11 = inlined_call_operand.vmem [shape: f32[2,1], index: 11, kind: output, shape index: {}]  }
   0x1   :  { %v16_v0 = vstv %s2667_s10 }
   0x2   :  { %17 = vst [vmem:[#allocation2] sm:$0x1] %v16_v0 }
   0x3   :  { %18 = vsyncpa [#allocation4], 0 }
   0x4   :  { %19 = vsyncpa [#allocation6], 0 }
   0x5   :  { %23 = vsyncadd [#allocation4], 768  ;;  %s24_s21 = sshll.u32 %s2657_s0, 4  ;;  %s2444_s22 = smov [#allocation3]   ;;  %s25_s21 = int_to_ptr.hbm [resolvable:$true] %s24_s21 }
   0x6   :  { %s26_s23 = sshll.u32 %s2444_s22, 4  ;;  %s37_s26 = sshll.u32 %s2658_s1, 4  ;;  %s27_s23 = int_to_ptr.vmem [resolvable:$true] %s26_s23  ;;  %s38_s26 = int_to_ptr.hbm [resolvable:$true] %s37_s26 }
   0x7   :  { %s2445_s27 = smov 256   ;;  %s2446_s28 = smov 16  }
   0x8   :  { %32 = dma.hbm_to_vmem [thread:$0]  %s25_s21, 256, %s27_s23, [#allocation4], %s2445_s27, %s2445_s27, %s2446_s28  }
   0x9   :  { %s2447_s10 = smov [#allocation5]   ;;  %s2448_s30 = smov 128  }
   0xa   :  { %s39_s29 = sshll.u32 %s2447_s10, 4  ;;  %s2449_s12 = smov 8   ;;  %s40_s29 = int_to_ptr.vmem [resolvable:$true] %s39_s29 }
   0xb   :  { %45 = dma.hbm_to_vmem [thread:$0]  %s38_s26, 16384, %s40_s29, [#allocation6], %s2448_s30, %s2448_s30, %s2449_s12  }
   0xc   :  { %2440 = dma.done.wait [#allocation4], 1024  }
   0xd   :  { %2441 = vsyncadd [#allocation4], 4294966272 }
   0xe   :  { %2442 = dma.done.wait [#allocation6], 16384  }
   0xf   :  { %2443 = vsyncadd [#allocation6], 4294950912  ;;  %v1631_v1 = vld [vmem:[#allocation5 + $0x70] sm:$0xf]  ;;  %v2218_v2 = vld [vmem:[#allocation5 + $0x74] sm:$0xf0] }
  0x10   :  { %v1695_v3 = vld [vmem:[#allocation5 + $0xf0] sm:$0xf]  ;;  %v1632_v4 = vor.u32 %v2218_v2, %v1631_v1  ;;  %v2234_v5 = vld [vmem:[#allocation5 + $0xf4] sm:$0xf0]  ;;  %v1623_v12 = vld [vmem:[#allocation5 + $0x60] sm:$0xf] }
  0x11   :  { %v1759_v6 = vld [vmem:[#allocation5 + $0x170] sm:$0xf]  ;;  %v2250_v7 = vld [vmem:[#allocation5 + $0x174] sm:$0xf0]  ;;  %v1696_v8 = vor.u32 %v2234_v5, %v1695_v3  ;;  %v2216_v14 = vld [vmem:[#allocation5 + $0x64] sm:$0xf0] }
  0x12   :  { %v1760_v9 = vor.u32 %v2250_v7, %v1759_v6  ;;  %v1823_v10 = vld [vmem:[#allocation5 + $0x1f0] sm:$0xf]  ;;  %v2266_v11 = vld [vmem:[#allocation5 + $0x1f4] sm:$0xf0]  ;;  %902 = vmatpush.bf16.msra.mxu0 %v1632_v4  ;;  %v1687_v15 = vld [vmem:[#allocation5 + $0xe0] sm:$0xf]  ;;  %v1624_v17 = vor.u32 %v2216_v14, %v1623_v12 }
  0x13   :  { %v1824_v13 = vor.u32 %v2266_v11, %v1823_v10  ;;  %v2232_v16 = vld [vmem:[#allocation5 + $0xe4] sm:$0xf0]  ;;  %915 = vmatpush.bf16.msra.mxu1 %v1696_v8  ;;  %v1751_v19 = vld [vmem:[#allocation5 + $0x160] sm:$0xf]  ;;  %v1615_v24 = vld [vmem:[#allocation5 + $0x50] sm:$0xf] }
  0x14   :  { %928 = vmatpush.bf16.msra.mxu2 %v1760_v9  ;;  %v1688_v18 = vor.u32 %v2232_v16, %v1687_v15  ;;  %v2248_v20 = vld [vmem:[#allocation5 + $0x164] sm:$0xf0]  ;;  %v1815_v21 = vld [vmem:[#allocation5 + $0x1e0] sm:$0xf]  ;;  %v2214_v25 = vld [vmem:[#allocation5 + $0x54] sm:$0xf0] }
  0x15   :  { %941 = vmatpush.bf16.msra.mxu3 %v1824_v13  ;;  %v1752_v22 = vor.u32 %v2248_v20, %v1751_v19  ;;  %v2264_v23 = vld [vmem:[#allocation5 + $0x1e4] sm:$0xf0]  ;;  %v1679_v27 = vld [vmem:[#allocation5 + $0xd0] sm:$0xf]  ;;  %v2230_v28 = vld [vmem:[#allocation5 + $0xd4] sm:$0xf0]  ;;  %v1616_v30 = vor.u32 %v2214_v25, %v1615_v24 }
  0x16   :  { %v1816_v26 = vor.u32 %v2264_v23, %v1815_v21  ;;  %v1743_v29 = vld [vmem:[#allocation5 + $0x150] sm:$0xf]  ;;  %903 = vmatpush.bf16.msra.mxu0 %v1624_v17  ;;  %v2246_v31 = vld [vmem:[#allocation5 + $0x154] sm:$0xf0]  ;;  %v1680_v34 = vor.u32 %v2230_v28, %v1679_v27  ;;  %v1607_v36 = vld [vmem:[#allocation5 + $0x40] sm:$0xf] }
  0x17   :  { %v1807_v32 = vld [vmem:[#allocation5 + $0x1d0] sm:$0xf]  ;;  %v2262_v33 = vld [vmem:[#allocation5 + $0x1d4] sm:$0xf0]  ;;  %916 = vmatpush.bf16.msra.mxu1 %v1688_v18  ;;  %v1744_v35 = vor.u32 %v2246_v31, %v1743_v29  ;;  %v2212_v37 = vld [vmem:[#allocation5 + $0x44] sm:$0xf0] }
  0x18   :  { %929 = vmatpush.bf16.msra.mxu2 %v1752_v22  ;;  %v1671_v38 = vld [vmem:[#allocation5 + $0xc0] sm:$0xf]  ;;  %v1808_v39 = vor.u32 %v2262_v33, %v1807_v32  ;;  %v2228_v40 = vld [vmem:[#allocation5 + $0xc4] sm:$0xf0]  ;;  %v1608_v45 = vor.u32 %v2212_v37, %v1607_v36  ;;  %v1599_v48 = vld [vmem:[#allocation5 + $0x30] sm:$0xf] }
  0x19   :  { %942 = vmatpush.bf16.msra.mxu3 %v1816_v26  ;;  %v1735_v41 = vld [vmem:[#allocation5 + $0x140] sm:$0xf]  ;;  %v2244_v42 = vld [vmem:[#allocation5 + $0x144] sm:$0xf0]  ;;  %v1672_v46 = vor.u32 %v2228_v40, %v1671_v38  ;;  %v2210_v49 = vld [vmem:[#allocation5 + $0x34] sm:$0xf0] }
  0x1a   :  { %v1799_v43 = vld [vmem:[#allocation5 + $0x1c0] sm:$0xf]  ;;  %v2260_v44 = vld [vmem:[#allocation5 + $0x1c4] sm:$0xf0]  ;;  %904 = vmatpush.bf16.msra.mxu0 %v1616_v30  ;;  %v1736_v47 = vor.u32 %v2244_v42, %v1735_v41  ;;  %v1663_v50 = vld [vmem:[#allocation5 + $0xb0] sm:$0xf]  ;;  %v1600_v57 = vor.u32 %v2210_v49, %v1599_v48 }
  0x1b   :  { %917 = vmatpush.bf16.msra.mxu1 %v1680_v34  ;;  %v1800_v51 = vor.u32 %v2260_v44, %v1799_v43  ;;  %v2226_v52 = vld [vmem:[#allocation5 + $0xb4] sm:$0xf0]  ;;  %v1727_v53 = vld [vmem:[#allocation5 + $0x130] sm:$0xf]  ;;  %v1591_v60 = vld [vmem:[#allocation5 + $0x20] sm:$0xf] }
  0x1c   :  { %930 = vmatpush.bf16.msra.mxu2 %v1744_v35  ;;  %v2242_v54 = vld [vmem:[#allocation5 + $0x134] sm:$0xf0]  ;;  %v1791_v55 = vld [vmem:[#allocation5 + $0x1b0] sm:$0xf]  ;;  %v1664_v58 = vor.u32 %v2226_v52, %v1663_v50  ;;  %v2208_v61 = vld [vmem:[#allocation5 + $0x24] sm:$0xf0] }
  0x1d   :  { %943 = vmatpush.bf16.msra.mxu3 %v1808_v39  ;;  %v2258_v56 = vld [vmem:[#allocation5 + $0x1b4] sm:$0xf0]  ;;  %v1728_v59 = vor.u32 %v2242_v54, %v1727_v53  ;;  %v1655_v62 = vld [vmem:[#allocation5 + $0xa0] sm:$0xf]  ;;  %v2224_v0 = vld [vmem:[#allocation5 + $0xa4] sm:$0xf0]  ;;  %v1592_v5 = vor.u32 %v2208_v61, %v1591_v60 }
  0x1e   :  { %905 = vmatpush.bf16.msra.mxu0 %v1608_v45  ;;  %v1792_v63 = vor.u32 %v2258_v56, %v1791_v55  ;;  %v1719_v1 = vld [vmem:[#allocation5 + $0x120] sm:$0xf]  ;;  %v2240_v2 = vld [vmem:[#allocation5 + $0x124] sm:$0xf0]  ;;  %v1656_v6 = vor.u32 %v2224_v0, %v1655_v62  ;;  %v1583_v8 = vld [vmem:[#allocation5 + $0x10] sm:$0xf] }
  0x1f   :  { %918 = vmatpush.bf16.msra.mxu1 %v1672_v46  ;;  %v1783_v3 = vld [vmem:[#allocation5 + $0x1a0] sm:$0xf]  ;;  %v2256_v4 = vld [vmem:[#allocation5 + $0x1a4] sm:$0xf0]  ;;  %v1720_v7 = vor.u32 %v2240_v2, %v1719_v1  ;;  %v2206_v9 = vld [vmem:[#allocation5 + $0x14] sm:$0xf0] }
  0x20   :  { %931 = vmatpush.bf16.msra.mxu2 %v1736_v47  ;;  %v1647_v10 = vld [vmem:[#allocation5 + $0x90] sm:$0xf]  ;;  %v1784_v11 = vor.u32 %v2256_v4, %v1783_v3  ;;  %v2222_v12 = vld [vmem:[#allocation5 + $0x94] sm:$0xf0]  ;;  %v1584_v17 = vor.u32 %v2206_v9, %v1583_v8  ;;  %v1575_v18 = vld [vmem:[#allocation5] sm:$0xf] }
  0x21   :  { %944 = vmatpush.bf16.msra.mxu3 %v1800_v51  ;;  %v1711_v13 = vld [vmem:[#allocation5 + $0x110] sm:$0xf]  ;;  %v2238_v14 = vld [vmem:[#allocation5 + $0x114] sm:$0xf0]  ;;  %v2204_v19 = vld [vmem:[#allocation5 + $0x4] sm:$0xf0]  ;;  %v1648_v20 = vor.u32 %v2222_v12, %v1647_v10 }
  0x22   :  { %906 = vmatpush.bf16.msra.mxu0 %v1600_v57  ;;  %v1775_v15 = vld [vmem:[#allocation5 + $0x190] sm:$0xf]  ;;  %v2254_v16 = vld [vmem:[#allocation5 + $0x194] sm:$0xf0]  ;;  %v1712_v21 = vor.u32 %v2238_v14, %v1711_v13  ;;  %v1639_v22 = vld [vmem:[#allocation5 + $0x80] sm:$0xf]  ;;  %v1576_v32 = vor.u32 %v2204_v19, %v1575_v18 }
  0x23   :  { %919 = vmatpush.bf16.msra.mxu1 %v1664_v58  ;;  %v2220_v23 = vld [vmem:[#allocation5 + $0x84] sm:$0xf0]  ;;  %v1703_v24 = vld [vmem:[#allocation5 + $0x100] sm:$0xf]  ;;  %v1776_v25 = vor.u32 %v2254_v16, %v1775_v15  ;;  %v1887_v29 = vld [vmem:[#allocation5 + $0x270] sm:$0xf] }
  0x24   :  { %932 = vmatpush.bf16.msra.mxu2 %v1728_v59  ;;  %v2236_v26 = vld [vmem:[#allocation5 + $0x104] sm:$0xf0]  ;;  %v1767_v27 = vld [vmem:[#allocation5 + $0x180] sm:$0xf]  ;;  %v2282_v30 = vld [vmem:[#allocation5 + $0x274] sm:$0xf0]  ;;  %v1640_v36 = vor.u32 %v2220_v23, %v1639_v22 }
  0x25   :  { %945 = vmatpush.bf16.msra.mxu3 %v1792_v63  ;;  %v2252_v28 = vld [vmem:[#allocation5 + $0x184] sm:$0xf0]  ;;  %v1951_v31 = vld [vmem:[#allocation5 + $0x2f0] sm:$0xf]  ;;  %v2298_v33 = vld [vmem:[#allocation5 + $0x2f4] sm:$0xf0]  ;;  %v1704_v37 = vor.u32 %v2236_v26, %v1703_v24  ;;  %v1888_v41 = vor.u32 %v2282_v30, %v1887_v29 }
  0x26   :  { %907 = vmatpush.bf16.msra.mxu0 %v1592_v5  ;;  %v2015_v34 = vld [vmem:[#allocation5 + $0x370] sm:$0xf]  ;;  %v2314_v35 = vld [vmem:[#allocation5 + $0x374] sm:$0xf0]  ;;  %v1768_v40 = vor.u32 %v2252_v28, %v1767_v27  ;;  %v1879_v42 = vld [vmem:[#allocation5 + $0x260] sm:$0xf]  ;;  %v1952_v44 = vor.u32 %v2298_v33, %v1951_v31 }
  0x27   :  { %920 = vmatpush.bf16.msra.mxu1 %v1656_v6  ;;  %v2079_v38 = vld [vmem:[#allocation5 + $0x3f0] sm:$0xf]  ;;  %v2330_v39 = vld [vmem:[#allocation5 + $0x3f4] sm:$0xf0]  ;;  %v2280_v43 = vld [vmem:[#allocation5 + $0x264] sm:$0xf0]  ;;  %v2016_v45 = vor.u32 %v2314_v35, %v2015_v34 }
  0x28   :  { %933 = vmatpush.bf16.msra.mxu2 %v1720_v7  ;;  %v1943_v46 = vld [vmem:[#allocation5 + $0x2e0] sm:$0xf]  ;;  %v2296_v47 = vld [vmem:[#allocation5 + $0x2e4] sm:$0xf0]  ;;  %v2080_v49 = vor.u32 %v2330_v39, %v2079_v38  ;;  %v1871_v53 = vld [vmem:[#allocation5 + $0x250] sm:$0xf]  ;;  %v1880_v57 = vor.u32 %v2280_v43, %v1879_v42 }
  0x29   :  { %946 = vmatpush.bf16.msra.mxu3 %v1784_v11  ;;  %v2007_v48 = vld [vmem:[#allocation5 + $0x360] sm:$0xf]  ;;  %v2312_v50 = vld [vmem:[#allocation5 + $0x364] sm:$0xf0]  ;;  %v75_v55 = vld [vmem:[#allocation3 + $0x10] sm:$0xff]  ;;  %v1944_v60 = vor.u32 %v2296_v47, %v1943_v46 }
  0x2a   :  { %908 = vmatpush.bf16.msra.mxu0 %v1584_v17  ;;  %v2071_v51 = vld [vmem:[#allocation5 + $0x3e0] sm:$0xf]  ;;  %v2328_v52 = vld [vmem:[#allocation5 + $0x3e4] sm:$0xf0]  ;;  %v2278_v58 = vld [vmem:[#allocation5 + $0x254] sm:$0xf0]  ;;  %v2008_v61 = vor.u32 %v2312_v50, %v2007_v48 }
  0x2b   :  { %921 = vmatpush.bf16.msra.mxu1 %v1648_v20  ;;  %v73_v54 = vld [vmem:[#allocation3] sm:$0xff]  ;;  %v79_v59 = vld [vmem:[#allocation3 + $0x30] sm:$0xff]  ;;  %v2294_v63 = vld [vmem:[#allocation5 + $0x2d4] sm:$0xf0]  ;;  %91 = vst [vmem:[#allocation1 + $0x1] ss:$4 sm:$0xff] %v75_v55  ;;  %v2072_v0 = vor.u32 %v2328_v52, %v2071_v51  ;;  %v1872_v5 = vor.u32 %v2278_v58, %v1871_v53 }
  0x2c   :  { %934 = vmatpush.bf16.msra.mxu2 %v1712_v21  ;;  %v77_v56 = vld [vmem:[#allocation3 + $0x20] sm:$0xff]  ;;  %89 = vst [vmem:[#allocation1] ss:$4 sm:$0xff] %v73_v54  ;;  %v1935_v62 = vld [vmem:[#allocation5 + $0x2d0] sm:$0xf]  ;;  %v74_v39 = vld [vmem:[#allocation3 + $0x8] sm:$0xff] }
  0x2d   :  { %947 = vmatpush.bf16.msra.mxu3 %v1776_v25  ;;  %v1999_v1 = vld [vmem:[#allocation5 + $0x350] sm:$0xf]  ;;  %v2310_v2 = vld [vmem:[#allocation5 + $0x354] sm:$0xf0]  ;;  %93 = vst [vmem:[#allocation1 + $0x2] ss:$4 sm:$0xff] %v77_v56  ;;  %v1936_v7 = vor.u32 %v2294_v63, %v1935_v62 }
  0x2e   :  { %909 = vmatpush.bf16.msra.mxu0 %v1576_v32  ;;  %v2063_v3 = vld [vmem:[#allocation5 + $0x3d0] sm:$0xf]  ;;  %v2326_v4 = vld [vmem:[#allocation5 + $0x3d4] sm:$0xf0]  ;;  %95 = vst [vmem:[#allocation1 + $0x3] ss:$4 sm:$0xff] %v79_v59  ;;  %v2000_v8 = vor.u32 %v2310_v2, %v1999_v1 }
  0x2f   :  { %922 = vmatpush.bf16.msra.mxu1 %v1640_v36  ;;  %v1863_v6 = vld [vmem:[#allocation5 + $0x240] sm:$0xf]  ;;  %v2276_v9 = vld [vmem:[#allocation5 + $0x244] sm:$0xf0]  ;;  %v2064_v12 = vor.u32 %v2326_v4, %v2063_v3  ;;  %v1855_v17 = vld [vmem:[#allocation5 + $0x230] sm:$0xf] }
  0x30   :  { %935 = vmatpush.bf16.msra.mxu2 %v1704_v37  ;;  %v1927_v10 = vld [vmem:[#allocation5 + $0x2c0] sm:$0xf]  ;;  %v2292_v11 = vld [vmem:[#allocation5 + $0x2c4] sm:$0xf0]  ;;  %v2274_v18 = vld [vmem:[#allocation5 + $0x234] sm:$0xf0]  ;;  %v1864_v19 = vor.u32 %v2276_v9, %v1863_v6 }
  0x31   :  { %948 = vmatpush.bf16.msra.mxu3 %v1768_v40  ;;  %v1991_v13 = vld [vmem:[#allocation5 + $0x340] sm:$0xf]  ;;  %v2308_v14 = vld [vmem:[#allocation5 + $0x344] sm:$0xf0]  ;;  %v1919_v20 = vld [vmem:[#allocation5 + $0x2b0] sm:$0xf]  ;;  %v1928_v23 = vor.u32 %v2292_v11, %v1927_v10  ;;  %v1856_v35 = vor.u32 %v2274_v18, %v1855_v17 }
  0x32   :  { %954 = vmatpush.bf16.msrb.mxu0 %v1888_v41  ;;  %v2055_v15 = vld [vmem:[#allocation5 + $0x3c0] sm:$0xf]  ;;  %v2324_v16 = vld [vmem:[#allocation5 + $0x3c4] sm:$0xf0]  ;;  %v2290_v21 = vld [vmem:[#allocation5 + $0x2b4] sm:$0xf0]  ;;  %v1992_v24 = vor.u32 %v2308_v14, %v1991_v13 }
  0x33   :  { %967 = vmatpush.bf16.msrb.mxu1 %v1952_v44  ;;  %v1983_v22 = vld [vmem:[#allocation5 + $0x330] sm:$0xf]  ;;  %v2306_v25 = vld [vmem:[#allocation5 + $0x334] sm:$0xf0]  ;;  %v2056_v28 = vor.u32 %v2324_v16, %v2055_v15  ;;  %v1847_v38 = vld [vmem:[#allocation5 + $0x220] sm:$0xf]  ;;  %v1920_v40 = vor.u32 %v2290_v21, %v1919_v20 }
  0x34   :  { %980 = vmatpush.bf16.msrb.mxu2 %v2016_v45  ;;  %v2047_v26 = vld [vmem:[#allocation5 + $0x3b0] sm:$0xf]  ;;  %v2322_v27 = vld [vmem:[#allocation5 + $0x3b4] sm:$0xf0]  ;;  %v1984_v41 = vor.u32 %v2306_v25, %v1983_v22  ;;  %v2272_v42 = vld [vmem:[#allocation5 + $0x224] sm:$0xf0] }
  0x35   :  { %993 = vmatpush.bf16.msrb.mxu3 %v2080_v49  ;;  %v106_v29 = vld.sshfl [vmem:[#allocation1 + $0x10] sm:$0xff pattern:$0x73625140]  ;;  %v104_v30 = vld.sshfl [vmem:[#allocation1] sm:$0xff pattern:$0x73625140]  ;;  %v2048_v45 = vor.u32 %v2322_v27, %v2047_v26  ;;  %v1848_v52 = vor.u32 %v2272_v42, %v1847_v38 }
  0x36   :  { %955 = vmatpush.bf16.msrb.mxu0 %v1880_v57  ;;  %v2519_v31 = vpack.c.bf16 %v106_v29, %v106_v29  ;;  %v2521_v32 = vpack.c.bf16 %v104_v30, %v104_v30  ;;  %v107_v33 = vld.sshfl [vmem:[#allocation1 + $0x18] sm:$0xff pattern:$0x73625140]  ;;  %v105_v34 = vld.sshfl [vmem:[#allocation1 + $0x8] sm:$0xff pattern:$0x73625140] }
  0x37   :  { %968 = vmatpush.bf16.msrb.mxu1 %v1944_v60  ;;  %v2523_v36 = vpack.c.bf16 %v107_v33, %v107_v33  ;;  %v2525_v37 = vpack.c.bf16 %v105_v34, %v105_v34  ;;  %v1911_v43 = vld [vmem:[#allocation5 + $0x2a0] sm:$0xf]  ;;  %v2288_v44 = vld [vmem:[#allocation5 + $0x2a4] sm:$0xf0]  ;;  %v1839_v50 = vld [vmem:[#allocation5 + $0x210] sm:$0xf] }
  0x38   :  { %981 = vmatpush.bf16.msrb.mxu2 %v2008_v61  ;;  %v1975_v46 = vld [vmem:[#allocation5 + $0x320] sm:$0xf]  ;;  %v2304_v47 = vld [vmem:[#allocation5 + $0x324] sm:$0xf0]  ;;  %910 = vmatmul.bf16.vlgmr.msra.gmra.mxu0 %v2521_v32  ;;  %v2270_v51 = vld [vmem:[#allocation5 + $0x214] sm:$0xf0]  ;;  %v1912_v56 = vor.u32 %v2288_v44, %v1911_v43 }
  0x39   :  { %994 = vmatpush.bf16.msrb.mxu3 %v2072_v0  ;;  %936 = vmatmul.bf16.vlgmr.msra.gmra.mxu2 %v2519_v31  ;;  %v2039_v48 = vld [vmem:[#allocation5 + $0x3a0] sm:$0xf]  ;;  %v2320_v49 = vld [vmem:[#allocation5 + $0x3a4] sm:$0xf0]  ;;  %v1903_v53 = vld [vmem:[#allocation5 + $0x290] sm:$0xf]  ;;  %v1976_v57 = vor.u32 %v2304_v47, %v1975_v46  ;;  %v1840_v2 = vor.u32 %v2270_v51, %v1839_v50 }
  0x3a   :  { %956 = vmatpush.bf16.msrb.mxu0 %v1872_v5  ;;  %949 = vmatmul.bf16.vlgmr.msra.gmra.mxu3 %v2523_v36  ;;  %v2286_v54 = vld [vmem:[#allocation5 + $0x294] sm:$0xf0]  ;;  %v1967_v55 = vld [vmem:[#allocation5 + $0x310] sm:$0xf]  ;;  %v78_v59 = vld [vmem:[#allocation3 + $0x28] sm:$0xff]  ;;  %v2040_v61 = vor.u32 %v2320_v49, %v2039_v48 }
  0x3b   :  { %969 = vmatpush.bf16.msrb.mxu1 %v1936_v7  ;;  %v76_v58 = vld [vmem:[#allocation3 + $0x18] sm:$0xff]  ;;  %97 = vst [vmem:[#allocation1 + $0x20] ss:$4 sm:$0xff] %v74_v39  ;;  %v2031_v63 = vld [vmem:[#allocation5 + $0x390] sm:$0xf]  ;;  %v1904_v5 = vor.u32 %v2286_v54, %v1903_v53 }
  0x3c   :  { %982 = vmatpush.bf16.msrb.mxu2 %v2000_v8  ;;  %923 = vmatmul.bf16.vlgmr.msra.gmra.mxu1 %v2525_v37  ;;  %v80_v60 = vld [vmem:[#allocation3 + $0x38] sm:$0xff]  ;;  %99 = vst [vmem:[#allocation1 + $0x21] ss:$4 sm:$0xff] %v76_v58  ;;  %v1831_v1 = vld [vmem:[#allocation5 + $0x200] sm:$0xf] }
  0x3d   :  { %995 = vmatpush.bf16.msrb.mxu3 %v2064_v12  ;;  %v2302_v62 = vld [vmem:[#allocation5 + $0x314] sm:$0xf0]  ;;  %101 = vst [vmem:[#allocation1 + $0x22] ss:$4 sm:$0xff] %v78_v59  ;;  %v2268_v3 = vld [vmem:[#allocation5 + $0x204] sm:$0xf0] }
  0x3e   :  { %957 = vmatpush.bf16.msrb.mxu0 %v1864_v19  ;;  %v2318_v0 = vld [vmem:[#allocation5 + $0x394] sm:$0xf0]  ;;  %v1895_v4 = vld [vmem:[#allocation5 + $0x280] sm:$0xf]  ;;  %103 = vst [vmem:[#allocation1 + $0x23] ss:$4 sm:$0xff] %v80_v60  ;;  %v1968_v6 = vor.u32 %v2302_v62, %v1967_v55  ;;  %v1832_v17 = vor.u32 %v2268_v3, %v1831_v1 }
  0x3f   :  { %970 = vmatpush.bf16.msrb.mxu1 %v1928_v23  ;;  %v2284_v7 = vld [vmem:[#allocation5 + $0x284] sm:$0xf0]  ;;  %v1959_v8 = vld [vmem:[#allocation5 + $0x300] sm:$0xf]  ;;  %v2032_v10 = vor.u32 %v2318_v0, %v2031_v63  ;;  %v2217_v13 = vld [vmem:[#allocation5 + $0x74] sm:$0xf] }
  0x40   :  { %983 = vmatpush.bf16.msrb.mxu2 %v1992_v24  ;;  %v2300_v9 = vld [vmem:[#allocation5 + $0x304] sm:$0xf0]  ;;  %v2023_v11 = vld [vmem:[#allocation5 + $0x380] sm:$0xf]  ;;  %v1633_v14 = vld [vmem:[#allocation5 + $0x78] sm:$0xf0]  ;;  %v1896_v21 = vor.u32 %v2284_v7, %v1895_v4 }
  0x41   :  { %996 = vmatpush.bf16.msrb.mxu3 %v2056_v28  ;;  %v2316_v12 = vld [vmem:[#allocation5 + $0x384] sm:$0xf0]  ;;  %v2233_v15 = vld [vmem:[#allocation5 + $0xf4] sm:$0xf]  ;;  %v1697_v16 = vld [vmem:[#allocation5 + $0xf8] sm:$0xf0]  ;;  %v1960_v22 = vor.u32 %v2300_v9, %v1959_v8  ;;  %v1636_v27 = vor.u32 %v2217_v13, %v1633_v14 }
  0x42   :  { %958 = vmatpush.bf16.msrb.mxu0 %v1856_v35  ;;  %v2249_v18 = vld [vmem:[#allocation5 + $0x174] sm:$0xf]  ;;  %v1761_v19 = vld [vmem:[#allocation5 + $0x178] sm:$0xf0]  ;;  %v2215_v24 = vld [vmem:[#allocation5 + $0x64] sm:$0xf]  ;;  %v2024_v26 = vor.u32 %v2316_v12, %v2023_v11  ;;  %v1700_v34 = vor.u32 %v2233_v15, %v1697_v16 }
  0x43   :  { %971 = vmatpush.bf16.msrb.mxu1 %v1920_v40  ;;  %v2265_v20 = vld [vmem:[#allocation5 + $0x1f4] sm:$0xf]  ;;  %v1825_v23 = vld [vmem:[#allocation5 + $0x1f8] sm:$0xf0]  ;;  %v1625_v25 = vld [vmem:[#allocation5 + $0x68] sm:$0xf0]  ;;  %v1764_v35 = vor.u32 %v2249_v18, %v1761_v19 }
  0x44   :  { %984 = vmatpush.bf16.msrb.mxu2 %v1984_v41  ;;  %v2231_v28 = vld [vmem:[#allocation5 + $0xe4] sm:$0xf]  ;;  %v1689_v29 = vld [vmem:[#allocation5 + $0xe8] sm:$0xf0]  ;;  %v1828_v40 = vor.u32 %v2265_v20, %v1825_v23  ;;  %v1628_v48 = vor.u32 %v2215_v24, %v1625_v25  ;;  %v1617_v53 = vld [vmem:[#allocation5 + $0x58] sm:$0xf0] }
  0x45   :  { %997 = vmatpush.bf16.msrb.mxu3 %v2048_v45  ;;  %v2247_v30 = vld [vmem:[#allocation5 + $0x164] sm:$0xf]  ;;  %v1753_v33 = vld [vmem:[#allocation5 + $0x168] sm:$0xf0]  ;;  %v1692_v50 = vor.u32 %v2231_v28, %v1689_v29  ;;  %v2229_v54 = vld [vmem:[#allocation5 + $0xd4] sm:$0xf] }
  0x46   :  { %959 = vmatpush.bf16.msrb.mxu0 %v1848_v52  ;;  %v110_v38 = vld.sshfl [vmem:[#allocation1 + $0x30] sm:$0xff pattern:$0x73625140]  ;;  %v108_v39 = vld.sshfl [vmem:[#allocation1 + $0x20] sm:$0xff pattern:$0x73625140]  ;;  %v1756_v51 = vor.u32 %v2247_v30, %v1753_v33 }
  0x47   :  { %972 = vmatpush.bf16.msrb.mxu1 %v1912_v56  ;;  %v2531_v41 = vpack.c.bf16 %v110_v38, %v110_v38  ;;  %v111_v42 = vld.sshfl [vmem:[#allocation1 + $0x38] sm:$0xff pattern:$0x73625140]  ;;  %v109_v43 = vld.sshfl [vmem:[#allocation1 + $0x28] sm:$0xff pattern:$0x73625140]  ;;  %v2533_v44 = vpack.c.bf16 %v108_v39, %v108_v39 }
  0x48   :  { %985 = vmatpush.bf16.msrb.mxu2 %v1976_v57  ;;  %v2535_v45 = vpack.c.bf16 %v111_v42, %v111_v42  ;;  %v2263_v46 = vld [vmem:[#allocation5 + $0x1e4] sm:$0xf]  ;;  %v1817_v47 = vld [vmem:[#allocation5 + $0x1e8] sm:$0xf0]  ;;  %v2537_v49 = vpack.c.bf16 %v109_v43, %v109_v43  ;;  %v2213_v52 = vld [vmem:[#allocation5 + $0x54] sm:$0xf] }
  0x49   :  { %998 = vmatpush.bf16.msrb.mxu3 %v2040_v61  ;;  %v1820_v55 = vor.u32 %v2263_v46, %v1817_v47  ;;  %v1681_v56 = vld [vmem:[#allocation5 + $0xd8] sm:$0xf0]  ;;  %v2245_v57 = vld [vmem:[#allocation5 + $0x154] sm:$0xf]  ;;  %v1620_v61 = vor.u32 %v2213_v52, %v1617_v53  ;;  %v2211_v0 = vld [vmem:[#allocation5 + $0x44] sm:$0xf] }
  0x4a   :  { %960 = vmatpush.bf16.msrb.mxu0 %v1840_v2  ;;  %v1745_v58 = vld [vmem:[#allocation5 + $0x158] sm:$0xf0]  ;;  %v2261_v59 = vld [vmem:[#allocation5 + $0x1d4] sm:$0xf]  ;;  %v1684_v62 = vor.u32 %v2229_v54, %v1681_v56  ;;  %v1609_v1 = vld [vmem:[#allocation5 + $0x48] sm:$0xf0] }
  0x4b   :  { %973 = vmatpush.bf16.msrb.mxu1 %v1904_v5  ;;  %v1809_v60 = vld [vmem:[#allocation5 + $0x1d8] sm:$0xf0]  ;;  %v1748_v63 = vor.u32 %v2245_v57, %v1745_v58  ;;  %v2227_v2 = vld [vmem:[#allocation5 + $0xc4] sm:$0xf]  ;;  %v1673_v4 = vld [vmem:[#allocation5 + $0xc8] sm:$0xf0]  ;;  %v1612_v9 = vor.u32 %v2211_v0, %v1609_v1 }
  0x4c   :  { %986 = vmatpush.bf16.msrb.mxu2 %v1968_v6  ;;  %v1812_v3 = vor.u32 %v2261_v59, %v1809_v60  ;;  %v2243_v5 = vld [vmem:[#allocation5 + $0x144] sm:$0xf]  ;;  %v1737_v6 = vld [vmem:[#allocation5 + $0x148] sm:$0xf0]  ;;  %v2209_v12 = vld [vmem:[#allocation5 + $0x34] sm:$0xf] }
  0x4d   :  { %999 = vmatpush.bf16.msrb.mxu3 %v2032_v10  ;;  %v2259_v7 = vld [vmem:[#allocation5 + $0x1c4] sm:$0xf]  ;;  %v1801_v8 = vld [vmem:[#allocation5 + $0x1c8] sm:$0xf0]  ;;  %v1676_v10 = vor.u32 %v2227_v2, %v1673_v4  ;;  %v1740_v11 = vor.u32 %v2243_v5, %v1737_v6  ;;  %v1601_v13 = vld [vmem:[#allocation5 + $0x38] sm:$0xf0] }
  0x4e   :  { %961 = vmatpush.bf16.msrb.mxu0 %v1832_v17  ;;  %v2225_v14 = vld [vmem:[#allocation5 + $0xb4] sm:$0xf]  ;;  %v1804_v15 = vor.u32 %v2259_v7, %v1801_v8  ;;  %v1665_v16 = vld [vmem:[#allocation5 + $0xb8] sm:$0xf0]  ;;  %v2207_v24 = vld [vmem:[#allocation5 + $0x24] sm:$0xf] }
  0x4f   :  { %974 = vmatpush.bf16.msrb.mxu1 %v1896_v21  ;;  %v2241_v17 = vld [vmem:[#allocation5 + $0x134] sm:$0xf]  ;;  %v1729_v18 = vld [vmem:[#allocation5 + $0x138] sm:$0xf0]  ;;  %v1604_v21 = vor.u32 %v2209_v12, %v1601_v13  ;;  %v1593_v25 = vld [vmem:[#allocation5 + $0x28] sm:$0xf0] }
  0x50   :  { %987 = vmatpush.bf16.msrb.mxu2 %v1960_v22  ;;  %v2257_v19 = vld [vmem:[#allocation5 + $0x1b4] sm:$0xf]  ;;  %v1793_v20 = vld [vmem:[#allocation5 + $0x1b8] sm:$0xf0]  ;;  %v1668_v22 = vor.u32 %v2225_v14, %v1665_v16  ;;  %v1732_v23 = vor.u32 %v2241_v17, %v1729_v18  ;;  %v1657_v28 = vld [vmem:[#allocation5 + $0xa8] sm:$0xf0] }
  0x51   :  { %1000 = vmatpush.bf16.msrb.mxu3 %v2024_v26  ;;  %962 = vmatmul.bf16.vlgmr.msrb.gmra.mxu0 %v2533_v44  ;;  %v2223_v26 = vld [vmem:[#allocation5 + $0xa4] sm:$0xf]  ;;  %v1721_v30 = vld [vmem:[#allocation5 + $0x128] sm:$0xf0]  ;;  %v1585_v42 = vld [vmem:[#allocation5 + $0x18] sm:$0xf0] }
  0x52   :  { %1006 = vmatpush.bf16.msra.mxu0 %v1636_v27  ;;  %975 = vmatmul.bf16.vlgmr.msrb.gmra.mxu1 %v2537_v49  ;;  %v1796_v27 = vor.u32 %v2257_v19, %v1793_v20  ;;  %v2239_v29 = vld [vmem:[#allocation5 + $0x124] sm:$0xf]  ;;  %v1660_v38 = vor.u32 %v2223_v26, %v1657_v28  ;;  %v2221_v43 = vld [vmem:[#allocation5 + $0x94] sm:$0xf]  ;;  %v1649_v47 = vld [vmem:[#allocation5 + $0x98] sm:$0xf0] }
  0x53   :  { %1019 = vmatpush.bf16.msra.mxu1 %v1700_v34  ;;  %988 = vmatmul.bf16.vlgmr.msrb.gmra.mxu2 %v2531_v41  ;;  %v2255_v33 = vld [vmem:[#allocation5 + $0x1a4] sm:$0xf]  ;;  %v1785_v34 = vld [vmem:[#allocation5 + $0x1a8] sm:$0xf0]  ;;  %v1724_v39 = vor.u32 %v2239_v29, %v1721_v30  ;;  %v1777_v52 = vld [vmem:[#allocation5 + $0x198] sm:$0xf0]  ;;  %v1652_v56 = vor.u32 %v2221_v43, %v1649_v47 }
  0x54   :  { %1032 = vmatpush.bf16.msra.mxu2 %v1764_v35  ;;  %1001 = vmatmul.bf16.vlgmr.msrb.gmra.mxu3 %v2535_v45  ;;  %v1596_v35 = vor.u32 %v2207_v24, %v1593_v25  ;;  %v1788_v46 = vor.u32 %v2255_v33, %v1785_v34  ;;  %v2203_v54 = vld [vmem:[#allocation5 + $0x4] sm:$0xf]  ;;  %v1641_v59 = vld [vmem:[#allocation5 + $0x88] sm:$0xf0]  ;;  %v2281_v1 = vld [vmem:[#allocation5 + $0x274] sm:$0xf] }
  0x55   :  { %1045 = vmatpush.bf16.msra.mxu3 %v1828_v40  ;;  %v2205_v40 = vld [vmem:[#allocation5 + $0x14] sm:$0xf]  ;;  %v2219_v58 = vld [vmem:[#allocation5 + $0x84] sm:$0xf]  ;;  %v1769_v0 = vld [vmem:[#allocation5 + $0x188] sm:$0xf0] }
  0x56   :  { %1007 = vmatpush.bf16.msra.mxu0 %v1628_v48  ;;  %v2237_v48 = vld [vmem:[#allocation5 + $0x114] sm:$0xf]  ;;  %v1588_v53 = vor.u32 %v2205_v40, %v1585_v42  ;;  %v2235_v60 = vld [vmem:[#allocation5 + $0x104] sm:$0xf]  ;;  %v1889_v2 = vld [vmem:[#allocation5 + $0x278] sm:$0xf0]  ;;  %v1644_v8 = vor.u32 %v2219_v58, %v1641_v59 }
  0x57   :  { %1020 = vmatpush.bf16.msra.mxu1 %v1692_v50  ;;  %v1713_v50 = vld [vmem:[#allocation5 + $0x118] sm:$0xf0]  ;;  %v2313_v6 = vld [vmem:[#allocation5 + $0x374] sm:$0xf]  ;;  %v1892_v13 = vor.u32 %v2281_v1, %v1889_v2  ;;  %v2279_v16 = vld [vmem:[#allocation5 + $0x264] sm:$0xf] }
  0x58   :  { %1033 = vmatpush.bf16.msra.mxu2 %v1756_v51  ;;  %v2253_v51 = vld [vmem:[#allocation5 + $0x194] sm:$0xf]  ;;  %v1716_v57 = vor.u32 %v2237_v48, %v1713_v50  ;;  %v1953_v5 = vld [vmem:[#allocation5 + $0x2f8] sm:$0xf0]  ;;  %v1881_v17 = vld [vmem:[#allocation5 + $0x268] sm:$0xf0] }
  0x59   :  { %1046 = vmatpush.bf16.msra.mxu3 %v1820_v55  ;;  %v1577_v55 = vld [vmem:[#allocation5 + $0x8] sm:$0xf0]  ;;  %v2017_v7 = vld [vmem:[#allocation5 + $0x378] sm:$0xf0]  ;;  %v2295_v18 = vld [vmem:[#allocation5 + $0x2e4] sm:$0xf]  ;;  %v1884_v26 = vor.u32 %v2279_v16, %v1881_v17 }
  0x5a   :  { %1008 = vmatpush.bf16.msra.mxu0 %v1620_v61  ;;  %v1780_v61 = vor.u32 %v2253_v51, %v1777_v52  ;;  %v1580_v4 = vor.u32 %v2203_v54, %v1577_v55  ;;  %v1945_v20 = vld [vmem:[#allocation5 + $0x2e8] sm:$0xf0]  ;;  %v2277_v25 = vld [vmem:[#allocation5 + $0x254] sm:$0xf]  ;;  %v1937_v29 = vld [vmem:[#allocation5 + $0x2d8] sm:$0xf0] }
  0x5b   :  { %1021 = vmatpush.bf16.msra.mxu1 %v1684_v62  ;;  %v1705_v62 = vld [vmem:[#allocation5 + $0x108] sm:$0xf0]  ;;  %v2293_v28 = vld [vmem:[#allocation5 + $0x2d4] sm:$0xf]  ;;  %v1948_v30 = vor.u32 %v2295_v18, %v1945_v20  ;;  %v2065_v40 = vld [vmem:[#allocation5 + $0x3d8] sm:$0xf0] }
  0x5c   :  { %1034 = vmatpush.bf16.msra.mxu2 %v1748_v63  ;;  %v2251_v63 = vld [vmem:[#allocation5 + $0x184] sm:$0xf]  ;;  %v2073_v24 = vld [vmem:[#allocation5 + $0x3e8] sm:$0xf0]  ;;  %v2309_v34 = vld [vmem:[#allocation5 + $0x354] sm:$0xf]  ;;  %v1940_v43 = vor.u32 %v2293_v28, %v1937_v29 }
  0x5d   :  { %1047 = vmatpush.bf16.msra.mxu3 %v1812_v3  ;;  %v2297_v3 = vld [vmem:[#allocation5 + $0x2f4] sm:$0xf]  ;;  %v1772_v12 = vor.u32 %v2251_v63, %v1769_v0  ;;  %v2275_v47 = vld [vmem:[#allocation5 + $0x244] sm:$0xf]  ;;  %v1865_v48 = vld [vmem:[#allocation5 + $0x248] sm:$0xf0] }
  0x5e   :  { %1009 = vmatpush.bf16.msra.mxu0 %v1612_v9  ;;  %v1708_v9 = vor.u32 %v2235_v60, %v1705_v62  ;;  %v1956_v14 = vor.u32 %v2297_v3, %v1953_v5  ;;  %v2291_v50 = vld [vmem:[#allocation5 + $0x2c4] sm:$0xf]  ;;  %v1929_v51 = vld [vmem:[#allocation5 + $0x2c8] sm:$0xf0]  ;;  %v2289_v58 = vld [vmem:[#allocation5 + $0x2b4] sm:$0xf] }
  0x5f   :  { %1022 = vmatpush.bf16.msra.mxu1 %v1676_v10  ;;  %v2329_v10 = vld [vmem:[#allocation5 + $0x3f4] sm:$0xf]  ;;  %v2307_v52 = vld [vmem:[#allocation5 + $0x344] sm:$0xf]  ;;  %v1932_v55 = vor.u32 %v2291_v50, %v1929_v51  ;;  %v1921_v60 = vld [vmem:[#allocation5 + $0x2b8] sm:$0xf0] }
  0x60   :  { %1035 = vmatpush.bf16.msra.mxu2 %v1740_v11  ;;  %v2081_v11 = vld [vmem:[#allocation5 + $0x3f8] sm:$0xf0]  ;;  %v2323_v54 = vld [vmem:[#allocation5 + $0x3c4] sm:$0xf]  ;;  %v2321_v63 = vld [vmem:[#allocation5 + $0x3b4] sm:$0xf]  ;;  %v1924_v2 = vor.u32 %v2289_v58, %v1921_v60 }
  0x61   :  { %1048 = vmatpush.bf16.msra.mxu3 %v1804_v15  ;;  %v2020_v15 = vor.u32 %v2313_v6, %v2017_v7  ;;  %v2084_v19 = vor.u32 %v2329_v10, %v2081_v11  ;;  %v1985_v62 = vld [vmem:[#allocation5 + $0x338] sm:$0xf0]  ;;  %v1849_v5 = vld [vmem:[#allocation5 + $0x228] sm:$0xf0]  ;;  %v2287_v6 = vld [vmem:[#allocation5 + $0x2a4] sm:$0xf] }
  0x62   :  { %1010 = vmatpush.bf16.msra.mxu0 %v1604_v21  ;;  %v2311_v21 = vld [vmem:[#allocation5 + $0x364] sm:$0xf]  ;;  %v2049_v0 = vld [vmem:[#allocation5 + $0x3b8] sm:$0xf0]  ;;  %v1977_v10 = vld [vmem:[#allocation5 + $0x328] sm:$0xf0] }
  0x63   :  { %1023 = vmatpush.bf16.msra.mxu1 %v1668_v22  ;;  %v2009_v22 = vld [vmem:[#allocation5 + $0x368] sm:$0xf0]  ;;  %v2052_v7 = vor.u32 %v2321_v63, %v2049_v0  ;;  %v2319_v11 = vld [vmem:[#allocation5 + $0x3a4] sm:$0xf]  ;;  %v2269_v16 = vld [vmem:[#allocation5 + $0x214] sm:$0xf] }
  0x64   :  { %1036 = vmatpush.bf16.msra.mxu2 %v1732_v23  ;;  %v2327_v23 = vld [vmem:[#allocation5 + $0x3e4] sm:$0xf]  ;;  %v2012_v33 = vor.u32 %v2311_v21, %v2009_v22  ;;  %v1841_v17 = vld [vmem:[#allocation5 + $0x218] sm:$0xf0]  ;;  %v2285_v18 = vld [vmem:[#allocation5 + $0x294] sm:$0xf] }
  0x65   :  { %1049 = vmatpush.bf16.msra.mxu3 %v1796_v27  ;;  %v1873_v27 = vld [vmem:[#allocation5 + $0x258] sm:$0xf0]  ;;  %v2301_v21 = vld [vmem:[#allocation5 + $0x314] sm:$0xf]  ;;  %v2267_v28 = vld [vmem:[#allocation5 + $0x204] sm:$0xf] }
  0x66   :  { %1011 = vmatpush.bf16.msra.mxu0 %v1596_v35  ;;  %v2076_v35 = vor.u32 %v2327_v23, %v2073_v24  ;;  %v1876_v42 = vor.u32 %v2277_v25, %v1873_v27  ;;  %v1905_v20 = vld [vmem:[#allocation5 + $0x298] sm:$0xf0]  ;;  %v2317_v23 = vld [vmem:[#allocation5 + $0x394] sm:$0xf]  ;;  %v1844_v25 = vor.u32 %v2269_v16, %v1841_v17  ;;  %v1833_v29 = vld [vmem:[#allocation5 + $0x208] sm:$0xf0] }
  0x67   :  { %1024 = vmatpush.bf16.msra.mxu1 %v1660_v38  ;;  %v2001_v38 = vld [vmem:[#allocation5 + $0x358] sm:$0xf0]  ;;  %v2338_v51 = vld [vmem:[%s2660_s3 + $0x38] sm:$0xff]  ;;  %v2333_v63 = vld [vmem:[%s2660_s3 + $0x10] sm:$0xff] }
  0x68   :  { %1037 = vmatpush.bf16.msra.mxu2 %v1724_v39  ;;  %v2325_v39 = vld [vmem:[#allocation5 + $0x3d4] sm:$0xf]  ;;  %v1969_v22 = vld [vmem:[#allocation5 + $0x318] sm:$0xf0] }
  0x69   :  { %1050 = vmatpush.bf16.msra.mxu3 %v1788_v46  ;;  %v2004_v46 = vor.u32 %v2309_v34, %v2001_v38  ;;  %v2033_v24 = vld [vmem:[#allocation5 + $0x398] sm:$0xf0]  ;;  %v1972_v27 = vor.u32 %v2301_v21, %v1969_v22  ;;  %v1897_v34 = vld [vmem:[#allocation5 + $0x288] sm:$0xf0] }
  0x6a   :  { %1012 = vmatpush.bf16.msra.mxu0 %v1588_v53  ;;  %v1993_v53 = vld [vmem:[#allocation5 + $0x348] sm:$0xf0] }
  0x6b   :  { %1025 = vmatpush.bf16.msra.mxu1 %v1652_v56  ;;  %v2273_v56 = vld [vmem:[#allocation5 + $0x234] sm:$0xf]  ;;  %v1961_v38 = vld [vmem:[#allocation5 + $0x308] sm:$0xf0] }
  0x6c   :  { %1038 = vmatpush.bf16.msra.mxu2 %v1716_v57  ;;  %v1857_v57 = vld [vmem:[#allocation5 + $0x238] sm:$0xf0] }
  0x6d   :  { %1051 = vmatpush.bf16.msra.mxu3 %v1780_v61  ;;  %v2305_v61 = vld [vmem:[#allocation5 + $0x334] sm:$0xf]  ;;  %v1860_v1 = vor.u32 %v2273_v56, %v1857_v57 }
  0x6e   :  { %1013 = vmatpush.bf16.msra.mxu0 %v1580_v4  ;;  %v1988_v3 = vor.u32 %v2305_v61, %v1985_v62  ;;  %v2271_v4 = vld [vmem:[#allocation5 + $0x224] sm:$0xf] }
  0x6f   :  { %1026 = vmatpush.bf16.msra.mxu1 %v1644_v8  ;;  %v1913_v8 = vld [vmem:[#allocation5 + $0x2a8] sm:$0xf0] }
  0x70   :  { %1039 = vmatpush.bf16.msra.mxu2 %v1708_v9  ;;  %v2303_v9 = vld [vmem:[#allocation5 + $0x324] sm:$0xf] }
  0x71   :  { %1052 = vmatpush.bf16.msra.mxu3 %v1772_v12  ;;  %1014 = vmatmul.bf16.vlgmr.msra.gmra.mxu0 %v2521_v32  ;;  %v2057_v32 = vld [vmem:[#allocation5 + $0x3c8] sm:$0xf0] }
  0x72   :  { %1058 = vmatpush.bf16.msrb.mxu0 %v1892_v13  ;;  %1027 = vmatmul.bf16.vlgmr.msra.gmra.mxu1 %v2525_v37  ;;  %v1996_v37 = vor.u32 %v2307_v52, %v1993_v53  ;;  %v2060_v59 = vor.u32 %v2323_v54, %v2057_v32  ;;  %v2041_v12 = vld [vmem:[#allocation5 + $0x3a8] sm:$0xf0]  ;;  %v1852_v13 = vor.u32 %v2271_v4, %v1849_v5  ;;  %v2336_v32 = vld [vmem:[%s2660_s3 + $0x28] sm:$0xff] }
  0x73   :  { %1071 = vmatpush.bf16.msrb.mxu1 %v1956_v14  ;;  %1040 = vmatmul.bf16.vlgmr.msra.gmra.mxu2 %v2519_v31  ;;  %v2068_v31 = vor.u32 %v2325_v39, %v2065_v40  ;;  %v1916_v14 = vor.u32 %v2287_v6, %v1913_v8  ;;  %v2315_v39 = vld [vmem:[#allocation5 + $0x384] sm:$0xf]  ;;  %v2025_v40 = vld [vmem:[#allocation5 + $0x388] sm:$0xf0] }
  0x74   :  { %1084 = vmatpush.bf16.msrb.mxu2 %v2020_v15  ;;  %1053 = vmatmul.bf16.vlgmr.msra.gmra.mxu3 %v2523_v36  ;;  %v1868_v36 = vor.u32 %v2275_v47, %v1865_v48  ;;  %v1980_v15 = vor.u32 %v2303_v9, %v1977_v10  ;;  %v2028_v47 = vor.u32 %v2315_v39, %v2025_v40  ;;  %v2554_v48 = vld [vmem:[%s2659_s2] sm:$0x3]  ;;  %v2332_v4 = vld [vmem:[%s2660_s3 + $0x8] sm:$0xff] }
  0x75   :  { %1097 = vmatpush.bf16.msrb.mxu3 %v2084_v19  ;;  %v2044_v19 = vor.u32 %v2319_v11, %v2041_v12  ;;  %v258_v50 = vperm.slane %v2554_v48, 0  ;;  %v2331_v9 = vld [vmem:[%s2660_s3] sm:$0xff] }
  0x76   :  { %1059 = vmatpush.bf16.msrb.mxu0 %v1884_v26  ;;  %v1908_v26 = vor.u32 %v2285_v18, %v1905_v20 }
  0x77   :  { %1072 = vmatpush.bf16.msrb.mxu1 %v1948_v30  ;;  %v2283_v30 = vld [vmem:[#allocation5 + $0x284] sm:$0xf] }
  0x78   :  { %1085 = vmatpush.bf16.msrb.mxu2 %v2012_v33  ;;  %v2036_v33 = vor.u32 %v2317_v23, %v2033_v24 }
  0x79   :  { %1098 = vmatpush.bf16.msrb.mxu3 %v2076_v35  ;;  %v2299_v35 = vld [vmem:[#allocation5 + $0x304] sm:$0xf] }
  0x7a   :  { %1060 = vmatpush.bf16.msrb.mxu0 %v1876_v42  ;;  %v1836_v42 = vor.u32 %v2267_v28, %v1833_v29 }
  0x7b   :  { %1073 = vmatpush.bf16.msrb.mxu1 %v1940_v43  ;;  %v1900_v43 = vor.u32 %v2283_v30, %v1897_v34  ;;  %v2346_v34 = vld [vmem:[%s2660_s3 + $0x78] sm:$0xff] }
  0x7c   :  { %1086 = vmatpush.bf16.msrb.mxu2 %v2004_v46  ;;  %v1964_v46 = vor.u32 %v2299_v35, %v1961_v38  ;;  %v259_v38 = vperm.slane %v2554_v48, 1  ;;  %v2343_v48 = vld [vmem:[%s2660_s3 + $0x60] sm:$0xff] }
  0x7d   :  { %1099 = vmatpush.bf16.msrb.mxu3 %v2068_v31 }
  0x7e   :  { %1061 = vmatpush.bf16.msrb.mxu0 %v1868_v36 }
  0x7f   :  { %1074 = vmatpush.bf16.msrb.mxu1 %v1932_v55 }
  0x80   :  { %1087 = vmatpush.bf16.msrb.mxu2 %v1996_v37  ;;  %v2335_v37 = vld [vmem:[%s2660_s3 + $0x20] sm:$0xff] }
  0x81   :  { %1100 = vmatpush.bf16.msrb.mxu3 %v2060_v59  ;;  %v2334_v59 = vld [vmem:[%s2660_s3 + $0x18] sm:$0xff] }
  0x82   :  { %1062 = vmatpush.bf16.msrb.mxu0 %v1860_v1 }
  0x83   :  { %1075 = vmatpush.bf16.msrb.mxu1 %v1924_v2 }
  0x84   :  { %1088 = vmatpush.bf16.msrb.mxu2 %v1988_v3 }
  0x85   :  { %1101 = vmatpush.bf16.msrb.mxu3 %v2052_v7 }
  0x86   :  { %1063 = vmatpush.bf16.msrb.mxu0 %v1852_v13 }
  0x87   :  { %1076 = vmatpush.bf16.msrb.mxu1 %v1916_v14 }
  0x88   :  { %1089 = vmatpush.bf16.msrb.mxu2 %v1980_v15 }
  0x89   :  { %1102 = vmatpush.bf16.msrb.mxu3 %v2044_v19 }
  0x8a   :  { %1064 = vmatpush.bf16.msrb.mxu0 %v1844_v25 }
  0x8b   :  { %1077 = vmatpush.bf16.msrb.mxu1 %v1908_v26 }
  0x8c   :  { %1090 = vmatpush.bf16.msrb.mxu2 %v1972_v27 }
  0x8d   :  { %1103 = vmatpush.bf16.msrb.mxu3 %v2036_v33 }
  0x8e   :  { %1065 = vmatpush.bf16.msrb.mxu0 %v1836_v42  ;;  %v2345_v42 = vld [vmem:[%s2660_s3 + $0x70] sm:$0xff] }
  0x8f   :  { %1078 = vmatpush.bf16.msrb.mxu1 %v1900_v43 }
  0x90   :  { %1091 = vmatpush.bf16.msrb.mxu2 %v1964_v46  ;;  %v2344_v46 = vld [vmem:[%s2660_s3 + $0x68] sm:$0xff] }
  0x91   :  { %1104 = vmatpush.bf16.msrb.mxu3 %v2028_v47  ;;  %1066 = vmatmul.bf16.vlgmr.msrb.gmra.mxu0 %v2533_v44 }
  0x92   :  { %1079 = vmatmul.bf16.vlgmr.msrb.gmra.mxu1 %v2537_v49  ;;  %1286 = vmatpush.bf16.msra.mxu0 %v2338_v51 }
  0x93   :  { %1092 = vmatmul.bf16.vlgmr.msrb.gmra.mxu2 %v2531_v41  ;;  %v2337_v41 = vld [vmem:[%s2660_s3 + $0x30] sm:$0xff]  ;;  %1299 = vmatpush.bf16.msra.mxu1 %v2346_v34 }
  0x94   :  { %1105 = vmatmul.bf16.vlgmr.msrb.gmra.mxu3 %v2535_v45 }
  0x96   :  { %1287 = vmatpush.bf16.msra.mxu0 %v2337_v41 }
  0x97   :  { %1300 = vmatpush.bf16.msra.mxu1 %v2345_v42 }
  0x9a   :  { %1288 = vmatpush.bf16.msra.mxu0 %v2336_v32 }
  0x9b   :  { %1301 = vmatpush.bf16.msra.mxu1 %v2344_v46 }
  0x9e   :  { %1289 = vmatpush.bf16.msra.mxu0 %v2335_v37 }
  0x9f   :  { %1302 = vmatpush.bf16.msra.mxu1 %v2343_v48 }
  0xa2   :  { %1290 = vmatpush.bf16.msra.mxu0 %v2334_v59 }
  0xa6   :  { %1291 = vmatpush.bf16.msra.mxu0 %v2333_v63 }
  0xaa   :  { %1292 = vmatpush.bf16.msra.mxu0 %v2332_v4 }
  0xae   :  { %1293 = vmatpush.bf16.msra.mxu0 %v2331_v9 }
  0xb5   :  { %v911_v31 = vpop.f32.mrf.mxu0 }
  0xb6   :  { %v912_v44 = vadd.f32 %v911_v31, %v258_v50  ;;  %v2342_v31 = vld [vmem:[%s2660_s3 + $0x58] sm:$0xff] }
  0xb7   :  { %1303 = vmatpush.bf16.msra.mxu1 %v2342_v31  ;;  %v2358_v31 = vld [vmem:[%s2664_s7 + $0x18] sm:$0xff] }
  0xb8   :  { %1481 = vmatpush.bf16.msra.mxu3 %v2358_v31 }
  0xb9   :  { %v924_v52 = vpop.f32.mrf.mxu1 }
  0xba   :  { %v925_v53 = vadd.f32 %v924_v52, %v912_v44 }
  0xbc   :  { %v937_v45 = vpop.f32.mrf.mxu2 }
  0xbd   :  { %v950_v49 = vpop.f32.mrf.mxu3  ;;  %v913_v54 = vpop.f32.mrf.mxu0  ;;  %v938_v55 = vadd.f32 %v937_v45, %v925_v53  ;;  %v2341_v45 = vld [vmem:[%s2660_s3 + $0x50] sm:$0xff]  ;;  %v2340_v53 = vld [vmem:[%s2660_s3 + $0x48] sm:$0xff] }
  0xbe   :  { %1304 = vmatpush.bf16.msra.mxu1 %v2341_v45 }
  0xbf   :  { %v951_v58 = vadd.f32 %v950_v49, %v938_v55 }
  0xc1   :  { %v926_v36 = vpop.f32.mrf.mxu1 }
  0xc2   :  { %1305 = vmatpush.bf16.msra.mxu1 %v2340_v53 }
  0xc4   :  { %v939_v56 = vpop.f32.mrf.mxu2 }
  0xc5   :  { %v952_v57 = vpop.f32.mrf.mxu3 }
  0xc6   :  { %v2339_v57 = vld [vmem:[%s2660_s3 + $0x40] sm:$0xff] }
  0xc7   :  { %1306 = vmatpush.bf16.msra.mxu1 %v2339_v57 }
  0xce   :  { %v963_v60 = vpop.f32.mrf.mxu0 }
  0xcf   :  { %v964_v61 = vadd.f32 %v963_v60, %v951_v58  ;;  %v976_v62 = vpop.f32.mrf.mxu1 }
  0xd1   :  { %v977_v0 = vadd.f32 %v976_v62, %v964_v61 }
  0xd6   :  { %v989_v1 = vpop.f32.mrf.mxu2  ;;  %v965_v6 = vpop.f32.mrf.mxu0 }
  0xd7   :  { %v990_v2 = vadd.f32 %v989_v1, %v977_v0  ;;  %v1002_v3 = vpop.f32.mrf.mxu3  ;;  %v978_v7 = vpop.f32.mrf.mxu1 }
  0xd9   :  { %v1003_v5 = vadd.f32 %v1002_v3, %v990_v2 }
  0xdb   :  { %v2085_v8 = vmul.f32 -1.442695, %v1003_v5 }
  0xdd   :  { %2370 = vpow2.f32 %v2085_v8 }
  0xde   :  { %v991_v10 = vpop.f32.mrf.mxu2 }
  0xdf   :  { %v1004_v11 = vpop.f32.mrf.mxu3 }
  0xe3   :  { %v2371_v12 = vpop.eup %2370 }
  0xe4   :  { %v1116_v13 = vadd.f32 1.0, %v2371_v12 }
  0xe6   :  { %2372 = vrcp.f32 %v1116_v13  ;;  %v1129_v18 = vand.u32 2147483648, %v1116_v13  ;;  %vm1123_vm0 = vweird.f32 %v1116_v13  ;;  %v1127_v21 = vand.u32 2147483647, %v1116_v13 }
  0xe8   :  { %v1130_v23 = vor.u32 1.1754944e-38, %v1129_v18  ;;  %vm1128_vm3 = vcmp.eq.f32.partialorder %v1127_v21, 8.507059e+37  ;;  %v2350_v18 = vld [vmem:[%s2662_s5 + $0x18] sm:$0xff]  ;;  %v2348_v21 = vld [vmem:[%s2662_s5 + $0x8] sm:$0xff] }
  0xec   :  { %v2373_v14 = vpop.eup %2372 }
  0xed   :  { %v1119_v15 = vmul.f32 %v2373_v14, %v1116_v13  ;;  %vm1124_vm1 = vweird.f32 %v2373_v14 }
  0xee   :  { %v1015_v17 = vpop.f32.mrf.mxu0  ;;  %vm1125_vm2 = vmor %vm1123_vm0, %vm1124_vm1  ;;  %vm1473_vm0 = vcmask 523264  }
  0xef   :  { %v1120_v16 = vsub.f32 1.0, %v1119_v15  ;;  %v1028_v19 = vpop.f32.mrf.mxu1  ;;  %v1016_v43 = vadd.f32 %v1015_v17, %v259_v38  ;;  %v2353_v15 = vld [vmem:[%s2662_s5 + $0x30] sm:$0xff]  ;;  %v2351_v17 = vld [vmem:[%s2662_s5 + $0x20] sm:$0xff] }
  0xf1   :  { %v1121_v20 = vmul.f32 %v2373_v14, %v1120_v16  ;;  %v1029_v47 = vadd.f32 %v1028_v19, %v1016_v43  ;;  %v2352_v16 = vld [vmem:[%s2662_s5 + $0x28] sm:$0xff]  ;;  %v2349_v19 = vld [vmem:[%s2662_s5 + $0x10] sm:$0xff] }
  0xf3   :  { %v1122_v22 = vadd.f32 %v2373_v14, %v1121_v20  ;;  %v2365_v20 = vld [vmem:[%s2661_s4] ss:$0 sm:$0xff] }
  0xf5   :  { %v1126_v25 = vsel %vm1125_vm2, %v2373_v14, %v1122_v22  ;;  %v2354_v14 = vld [vmem:[%s2662_s5 + $0x38] sm:$0xff] }
  0xf6   :  { %v1041_v24 = vpop.f32.mrf.mxu2  ;;  %v1131_v27 = vsel %vm1128_vm3, %v1130_v23, %v1126_v25  ;;  %v1017_v29 = vpop.f32.mrf.mxu0  ;;  %1402 = vmatpush.bf16.msra.mxu2 %v2354_v14  ;;  %v2347_v25 = vld [vmem:[%s2662_s5] sm:$0xff] }
  0xf7   :  { %v1054_v26 = vpop.f32.mrf.mxu3  ;;  %v1148_v28 = vmul.f32 %v1131_v27, %v1003_v5  ;;  %v1030_v30 = vpop.f32.mrf.mxu1  ;;  %v1042_v50 = vadd.f32 %v1041_v24, %v1029_v47 }
  0xf9   :  { %v1150_v33 = vmul.f32 2.0, %v1148_v28  ;;  %v1055_v51 = vadd.f32 %v1054_v26, %v1042_v50 }
  0xfa   :  { %1403 = vmatpush.bf16.msra.mxu2 %v2353_v15 }
  0xfb   :  { %v1152_v35 = vpack.c.bf16 %v1150_v33, %v1150_v33 }
  0xfd   :  { %1294 = vmatmul.bf16.vlgmr.msra.gmra.mxu0 %v1152_v35 }
  0xfe   :  { %v1043_v39 = vpop.f32.mrf.mxu2  ;;  %1404 = vmatpush.bf16.msra.mxu2 %v2352_v16 }
  0xff   :  { %v1056_v40 = vpop.f32.mrf.mxu3 }
 0x102   :  { %1405 = vmatpush.bf16.msra.mxu2 %v2351_v17 }
 0x106   :  { %1406 = vmatpush.bf16.msra.mxu2 %v2350_v18 }
 0x10a   :  { %1407 = vmatpush.bf16.msra.mxu2 %v2349_v19 }
 0x10e   :  { %v1067_v52 = vpop.f32.mrf.mxu0  ;;  %1408 = vmatpush.bf16.msra.mxu2 %v2348_v21  ;;  %v2368_v21 = vld [vmem:[%s2666_s9] ss:$0 sm:$0xff] }
 0x10f   :  { %v1080_v44 = vpop.f32.mrf.mxu1  ;;  %v1068_v41 = vadd.f32 %v1067_v52, %v1055_v51  ;;  %v2357_v51 = vld [vmem:[%s2664_s7 + $0x10] sm:$0xff]  ;;  %v2366_v52 = vld [vmem:[%s2663_s6] ss:$0 sm:$0xff] }
 0x110   :  { %1482 = vmatpush.bf16.msra.mxu3 %v2357_v51 }
 0x111   :  { %v1081_v49 = vadd.f32 %v1080_v44, %v1068_v41  ;;  %v2356_v44 = vld [vmem:[%s2664_s7 + $0x8] sm:$0xff] }
 0x112   :  { %1409 = vmatpush.bf16.msra.mxu2 %v2347_v25  ;;  %v2369_v25 = vld [vmem:[#allocation2] ss:$0 sm:$0xff] }
 0x114   :  { %1483 = vmatpush.bf16.msra.mxu3 %v2356_v44 }
 0x116   :  { %v1093_v54 = vpop.f32.mrf.mxu2  ;;  %v1069_v55 = vpop.f32.mrf.mxu0 }
 0x117   :  { %v1094_v32 = vadd.f32 %v1093_v54, %v1081_v49  ;;  %v1106_v36 = vpop.f32.mrf.mxu3  ;;  %v1082_v37 = vpop.f32.mrf.mxu1  ;;  %v2355_v49 = vld [vmem:[%s2664_s7] sm:$0xff] }
 0x118   :  { %1484 = vmatpush.bf16.msra.mxu3 %v2355_v49 }
 0x119   :  { %v1107_v56 = vadd.f32 %v1106_v36, %v1094_v32 }
 0x11b   :  { %v2086_v58 = vmul.f32 -1.442695, %v1107_v56 }
 0x11d   :  { %2374 = vpow2.f32 %v2086_v58 }
 0x11e   :  { %v1095_v59 = vpop.f32.mrf.mxu2 }
 0x11f   :  { %v1108_v60 = vpop.f32.mrf.mxu3 }
 0x123   :  { %v2375_v61 = vpop.eup %2374 }
 0x124   :  { %v1117_v62 = vadd.f32 1.0, %v2375_v61 }
 0x126   :  { %2376 = vrcp.f32 %v1117_v62  ;;  %v1144_v2 = vand.u32 2147483648, %v1117_v62  ;;  %v1142_v4 = vand.u32 2147483647, %v1117_v62  ;;  %vm1138_vm5 = vweird.f32 %v1117_v62 }
 0x128   :  { %v1145_v6 = vor.u32 1.1754944e-38, %v1144_v2  ;;  %vm1143_vm7 = vcmp.eq.f32.partialorder %v1142_v4, 8.507059e+37 }
 0x12c   :  { %v2377_v63 = vpop.eup %2376 }
 0x12d   :  { %v1134_v0 = vmul.f32 %v2377_v63, %v1117_v62  ;;  %vm1139_vm4 = vweird.f32 %v2377_v63 }
 0x12e   :  { %vm1140_vm6 = vmor %vm1138_vm5, %vm1139_vm4  ;;  %vm1516_vm5 = vcmask 64512  }
 0x12f   :  { %v1135_v1 = vsub.f32 1.0, %v1134_v0 }
 0x131   :  { %v1136_v3 = vmul.f32 %v2377_v63, %v1135_v1 }
 0x133   :  { %v1137_v5 = vadd.f32 %v2377_v63, %v1136_v3  ;;  %v2367_v3 = vld [vmem:[%s2665_s8] ss:$0 sm:$0xff] }
 0x135   :  { %v1141_v7 = vsel %vm1140_vm6, %v2377_v63, %v1137_v5  ;;  %vm1528_vm6 = vcmask 7168  }
 0x136   :  { %v1146_v8 = vsel %vm1143_vm7, %v1145_v6, %v1141_v7 }
 0x137   :  { %v1149_v9 = vmul.f32 %v1146_v8, %v1107_v56 }
 0x139   :  { %v1151_v10 = vmul.f32 2.0, %v1149_v9 }
 0x13b   :  { %v1153_v11 = vpack.c.bf16 %v1151_v10, %v1151_v10 }
 0x13d   :  { %1307 = vmatmul.bf16.vlgmr.msra.gmra.mxu1 %v1153_v11 }
 0x17a   :  { %v1295_v12 = vpop.f32.mrf.mxu0 }
 0x17b   :  { %v1296_v22 = vadd.f32 %v2365_v20, %v1295_v12 }
 0x182   :  { %v1297_v13 = vpop.f32.mrf.mxu0 }
 0x1ba   :  { %v1308_v23 = vpop.f32.mrf.mxu1 }
 0x1bb   :  { %v1309_v24 = vadd.f32 %v1308_v23, %v1296_v22 }
 0x1bd   :  { %v2151_v26 = vmul.f32 -1.442695, %v1309_v24 }
 0x1bf   :  { %2378 = vpow2.f32 %v2151_v26 }
 0x1c2   :  { %v1310_v27 = vpop.f32.mrf.mxu1 }
 0x1c5   :  { %v2379_v28 = vpop.eup %2378 }
 0x1c6   :  { %v1315_v29 = vadd.f32 1.0, %v2379_v28 }
 0x1c8   :  { %2380 = vrcp.f32 %v1315_v29  ;;  %v1327_v35 = vand.u32 2147483648, %v1315_v29  ;;  %v1325_v39 = vand.u32 2147483647, %v1315_v29  ;;  %vm1321_vm9 = vweird.f32 %v1315_v29 }
 0x1ca   :  { %v1328_v42 = vor.u32 1.1754944e-38, %v1327_v35  ;;  %vm1326_vm11 = vcmp.eq.f32.partialorder %v1325_v39, 8.507059e+37 }
 0x1ce   :  { %v2381_v30 = vpop.eup %2380 }
 0x1cf   :  { %v1317_v33 = vmul.f32 %v2381_v30, %v1315_v29  ;;  %vm1322_vm8 = vweird.f32 %v2381_v30 }
 0x1d0   :  { %vm1323_vm10 = vmor %vm1321_vm9, %vm1322_vm8 }
 0x1d1   :  { %v1318_v34 = vsub.f32 1.0, %v1317_v33 }
 0x1d3   :  { %v1319_v38 = vmul.f32 %v2381_v30, %v1318_v34 }
 0x1d5   :  { %v1320_v40 = vadd.f32 %v2381_v30, %v1319_v38 }
 0x1d7   :  { %v1324_v43 = vsel %vm1323_vm10, %v2381_v30, %v1320_v40 }
 0x1d8   :  { %v1329_v46 = vsel %vm1326_vm11, %v1328_v42, %v1324_v43 }
 0x1d9   :  { %v1331_v47 = vmul.f32 %v1329_v46, %v1309_v24 }
 0x1db   :  { %v1332_v48 = vmul.f32 2.0, %v1331_v47 }
 0x1dd   :  { %v1333_v50 = vpack.c.bf16 %v1332_v48, %v1332_v48 }
 0x1df   :  { %1410 = vmatmul.bf16.vlgmr.msra.gmra.mxu2 %v1333_v50 }
 0x262   :  { %v1411_v41 = vpop.f32.mrf.mxu2 }
 0x263   :  { %v1412_v45 = vadd.f32 %v2366_v52, %v1411_v41 }
 0x265   :  { %v2184_v53 = vmul.f32 -1.442695, %v1412_v45 }
 0x267   :  { %2382 = vpow2.f32 %v2184_v53 }
 0x26a   :  { %v1413_v54 = vpop.f32.mrf.mxu2 }
 0x26d   :  { %v2383_v32 = vpop.eup %2382 }
 0x26e   :  { %v1418_v36 = vadd.f32 1.0, %v2383_v32 }
 0x270   :  { %2384 = vrcp.f32 %v1418_v36  ;;  %v1430_v57 = vand.u32 2147483648, %v1418_v36  ;;  %v1428_v59 = vand.u32 2147483647, %v1418_v36  ;;  %vm1424_vm13 = vweird.f32 %v1418_v36 }
 0x272   :  { %v1431_v61 = vor.u32 1.1754944e-38, %v1430_v57  ;;  %vm1429_vm15 = vcmp.eq.f32.partialorder %v1428_v59, 8.507059e+37 }
 0x276   :  { %v2385_v55 = vpop.eup %2384 }
 0x277   :  { %v1420_v37 = vmul.f32 %v2385_v55, %v1418_v36  ;;  %vm1425_vm12 = vweird.f32 %v2385_v55 }
 0x278   :  { %vm1426_vm14 = vmor %vm1424_vm13, %vm1425_vm12 }
 0x279   :  { %v1421_v56 = vsub.f32 1.0, %v1420_v37 }
 0x27b   :  { %v1422_v58 = vmul.f32 %v2385_v55, %v1421_v56 }
 0x27d   :  { %v1423_v60 = vadd.f32 %v2385_v55, %v1422_v58 }
 0x27f   :  { %v1427_v62 = vsel %vm1426_vm14, %v2385_v55, %v1423_v60 }
 0x280   :  { %v1432_v63 = vsel %vm1429_vm15, %v1431_v61, %v1427_v62 }
 0x281   :  { %v1434_v0 = vmul.f32 %v1432_v63, %v1412_v45 }
 0x283   :  { %v1435_v1 = vmul.f32 2.0, %v1434_v0 }
 0x285   :  { %v1436_v2 = vpack.c.bf16 %v1435_v1, %v1435_v1 }
 0x287   :  { %2201 = vmatmul.msk.bf16.vlgmr.msra.gmra.mxu3 %vm1473_vm0, %v1436_v2 }
 0x30a   :  { %v1486_v4 = vpop.f32.mrf.mxu3 }
 0x30b   :  { %v1487_v5 = vadd.f32 %v2367_v3, %v1486_v4 }
 0x30d   :  { %v2202_v6 = vmul.f32 -1.442695, %v1487_v5 }
 0x30f   :  { %2386 = vpow2.f32 %v2202_v6 }
 0x312   :  { %v1488_v7 = vpop.f32.mrf.mxu3 }
 0x315   :  { %v2387_v8 = vpop.eup %2386 }
 0x316   :  { %v1493_v9 = vadd.f32 1.0, %v2387_v8 }
 0x318   :  { %2388 = vrcp.f32 %v1493_v9  ;;  %v1505_v13 = vand.u32 2147483648, %v1493_v9  ;;  %v1503_v15 = vand.u32 2147483647, %v1493_v9  ;;  %vm1499_vm2 = vweird.f32 %v1493_v9 }
 0x31a   :  { %v1506_v17 = vor.u32 1.1754944e-38, %v1505_v13  ;;  %vm1504_vm4 = vcmp.eq.f32.partialorder %v1503_v15, 8.507059e+37 }
 0x31e   :  { %v2389_v10 = vpop.eup %2388 }
 0x31f   :  { %v1495_v11 = vmul.f32 %v2389_v10, %v1493_v9  ;;  %vm1500_vm1 = vweird.f32 %v2389_v10 }
 0x320   :  { %vm1501_vm3 = vmor %vm1499_vm2, %vm1500_vm1 }
 0x321   :  { %v1496_v12 = vsub.f32 1.0, %v1495_v11 }
 0x323   :  { %v1497_v14 = vmul.f32 %v2389_v10, %v1496_v12 }
 0x325   :  { %v1498_v16 = vadd.f32 %v2389_v10, %v1497_v14 }
 0x327   :  { %v1502_v18 = vsel %vm1501_vm3, %v2389_v10, %v1498_v16 }
 0x328   :  { %v1507_v19 = vsel %vm1504_vm4, %v1506_v17, %v1502_v18 }
 0x329   :  { %v1509_v20 = vmul.f32 %v1507_v19, %v1487_v5 }
 0x32b   :  { %v1510_v22 = vmul.f32 2.0, %v1509_v20 }
 0x32d   :  { %v1515_v23 = vmul.f32 %v2368_v21, %v1510_v22 }
 0x32f   :  { %v1517_v24 = vsel %vm1516_vm5, %v1515_v23, 0.0 }
 0x330   :  { %1518 = vadd.xlane.f32.xlu0 %v1517_v24 }
 0x3a3   :  { %v1519_v26 = vpop.xlane.xlu0 %1518 }
 0x3a4   :  { %v1524_v27 = vadd.f32 %v2369_v25, %v1519_v26 }
 0x3a6   :  { %2390 = vtanh.f32 %v1524_v27 }
 0x3ac   :  { %v2391_v28 = vpop.eup %2390 }
 0x3ad   :  { %v1526_v29 = vadd.f32 1.0, %v2391_v28 }
 0x3af   :  { %v1527_v30 = vmul.f32 2.0, %v1526_v29 }
 0x3b1   :  { %1529 = vst.msk [vmem:[#allocation7] sm:$0xff] %vm1528_vm6, %v1527_v30 }
 0x3b8   :  { %v1548_v33 = vld [vmem:[#allocation7] sm:$0x3] }
 0x3b9   :  { %1549 = vst [vmem:[%s2668_s11] sm:$0x3] %v1548_v33 }
 0x3ba   :  { %1567 = vsyncpa [#allocation4], 1 }
 0x3bb   :  { %1568 = vsyncpa [#allocation6], 1 }

</bundles_post_ra>
